<compile_context>
chip_gen: v5e
topology: v5e:2x2
jax: 0.10.0
libtpu: 0.0.40
codegen_flags: <defaults>
</compile_context>

<pallas_src>
import math
import jax
import jax.numpy as jnp
from jax import lax
from jax.experimental import pallas as pl
from jax.experimental.pallas import tpu as pltpu


# ------------------------- fused forward kernel -------------------------
def make_fused_kernel(L, T, Bp, H, Vpad):
    """Fused LSTM(+folded head) kernel for static (L, T, Bp, H, Vpad)."""
    n_in = 3 * L + 5  # ids, tab0, b0, whh0, (wih,whh,b)*(L-1), h0, c0, Wf, bf

    def kernel(*refs):
        ids_ref, tab0_ref, b0_ref, whh0_ref = refs[0:4]
        layer_refs = [refs[4 + 3 * l: 7 + 3 * l] for l in range(L - 1)]
        h0_ref = refs[4 + 3 * (L - 1)]
        c0_ref = refs[5 + 3 * (L - 1)]
        wf_ref = refs[6 + 3 * (L - 1)]
        bf_ref = refs[7 + 3 * (L - 1)]
        sig_ref, hn_ref, cn_ref = refs[n_in:n_in + 3]

        TB = T * Bp

        # (A) In-kernel embedding lookup fused with the layer-0 input
        #     projection: one-hot(ids) @ (E @ W_ih0).  bf16 operands (the
        #     one-hot side is exact), f32 accumulation.  Bias added once,
        #     off the recurrence chain.
        ids = ids_ref[...]                                        # [TB,1] i32
        iota = lax.broadcasted_iota(jnp.int32, (TB, Vpad), 1)
        onehot = (iota == ids).astype(jnp.bfloat16)               # [TB,Vpad]
        xp0 = jnp.dot(onehot, tab0_ref[...],
                      preferred_element_type=jnp.float32) + b0_ref[...]  # [TB,4H]

        # Hoist all recurrent weights / states out of the unrolled loops.
        whh = [whh0_ref[...]] + [lr[1][...] for lr in layer_refs]
        wih = [None] + [lr[0][...] for lr in layer_refs]
        bias = [None] + [lr[2][...] for lr in layer_refs]
        h = [h0_ref[l] for l in range(L)]
        c = [c0_ref[l] for l in range(L)]

        def lstm_step(g, c_prev):
            # Gate column order is (i, f, o, g): sigmoid on the first 3H
            # lanes, tanh only on the last H -> half the EUP pushes per step.
            sg = jax.nn.sigmoid(g[:, :3 * H])
            gg = jnp.tanh(g[:, 3 * H:])
            i_g = sg[:, 0:H]
            f_g = sg[:, H:2 * H]
            o_g = sg[:, 2 * H:3 * H]
            c_new = f_g * c_prev + i_g * gg
            h_new = o_g * jnp.tanh(c_new)
            return h_new, c_new

        # (B) Wavefront recurrence: layer l step t depends only on
        #     (layer l-1, t) and (layer l, t-1), so the unrolled DAG's
        #     critical path is ~T+L dependent steps instead of L*T.
        #     All slices are static and sublane-aligned (Bp == 8).
        # TODO(synk): for large T switch to a T-chunk grid / fori_loop so all
        # step values are not live simultaneously (vreg pressure, v7x VMEM).
        for t in range(T):
            g0 = xp0[t * Bp:(t + 1) * Bp, :] + jnp.dot(
                h[0], whh[0], preferred_element_type=jnp.float32)
            h[0], c[0] = lstm_step(g0, c[0])
            for l in range(1, L):
                g = (jnp.dot(h[l - 1], wih[l], preferred_element_type=jnp.float32)
                     + jnp.dot(h[l], whh[l], preferred_element_type=jnp.float32)
                     + bias[l])
                h[l], c[l] = lstm_step(g, c[l])

        for l in range(L):
            hn_ref[l] = h[l]
            cn_ref[l] = c[l]

        # (C) Folded fc1->fc4 head (purely affine in eval; dropout identity):
        #     one [Bp,H]x[H,128] matmul + bias + sigmoid on the final-timestep
        #     hidden state, stored lane-dense.  Padded output columns hold
        #     sigmoid(0)=0.5 and are discarded by the wrapper (never reduced).
        z = jnp.dot(h[L - 1], wf_ref[...],
                    preferred_element_type=jnp.float32) + bf_ref[...]
        sig_ref[...] = jax.nn.sigmoid(z)

    return kernel


# ------------------------------ full forward ------------------------------
def sentiment_forward(params, x, hidden):
    """x: [B, T] int32 token ids; hidden = (h0, c0), each [L, B, H]."""
    h0, c0 = hidden
    B, T = x.shape
    L, _, H = h0.shape
    out_dim = params["output_dim"]
    emb = params["embedding"]                      # [V, E]
    V = emb.shape[0]

    Bp = ((B + 7) // 8) * 8                        # pad batch to f32 sublane tile
    Vpad = ((V + 127) // 128) * 128                # pad one-hot contraction dim

    # Token ids, time-major, batch-padded with token 0 (padded rows discarded).
    ids = jnp.zeros((T, Bp), jnp.int32).at[:, :B].set(x.T.astype(jnp.int32))
    ids = ids.reshape(T * Bp, 1)

    # Layer 0: fold the embedding lookup into the input projection table
    # (bf16, off the serial chain); keep its bias in f32.
    wih0_t, whh0_t, b0 = params["lstm"][0]         # [E,4H], [H,4H], [1,4H]
    tab0 = jnp.pad(emb @ wih0_t, ((0, Vpad - V), (0, 0))).astype(jnp.bfloat16)

    # Fold the affine fc1->fc4 head (exact: no nonlinearity, dropout=identity).
    (w1, b1), (w2, b2), (w3, b3), (w4, b4) = params["fc"]
    wf = ((w1 @ w2) @ w3) @ w4                     # [H, out_dim]
    bf = ((b1 @ w2 + b2) @ w3 + b3) @ w4 + b4      # [1, out_dim]
    pad_to = ((out_dim + 127) // 128) * 128        # lane-dense head output
    wf = jnp.pad(wf, ((0, 0), (0, pad_to - out_dim)))
    bf = jnp.pad(bf, ((0, 0), (0, pad_to - out_dim)))

    # Batch-pad initial states.
    h0p = jnp.zeros((L, Bp, H), jnp.float32).at[:, :B].set(h0)
    c0p = jnp.zeros((L, Bp, H), jnp.float32).at[:, :B].set(c0)

    args = [ids, tab0, b0, whh0_t]
    for l in range(1, L):
        wih_l, whh_l, b_l = params["lstm"][l]
        args += [wih_l, whh_l, b_l]
    args += [h0p, c0p, wf, bf]

    vspec = pl.BlockSpec(memory_space=pltpu.MemorySpace.VMEM)
    sig_pad, h_n, c_n = pl.pallas_call(
        make_fused_kernel(L, T, Bp, H, Vpad),
        out_shape=(jax.ShapeDtypeStruct((Bp, pad_to), jnp.float32),
                   jax.ShapeDtypeStruct((L, Bp, H), jnp.float32),
                   jax.ShapeDtypeStruct((L, Bp, H), jnp.float32)),
        in_specs=[vspec] * len(args),
        out_specs=(vspec, vspec, vspec),
        compiler_params=pltpu.CompilerParams(vmem_limit_bytes=32 * 1024 * 1024),
    )(*args)

    # Original module: sigmoid(fc4(...)).view(B, -1)[:, -1]
    # == last timestep, last output column.
    sig = sig_pad[:B, out_dim - 1]                 # [B]
    return sig, (h_n[:, :B], c_n[:, :B])


# --------------------------- deterministic init ---------------------------
def _reorder_gates(m, H):
    """PyTorch gate row order (i, f, g, o) -> kernel order (i, f, o, g)."""
    return jnp.concatenate([m[0:H], m[H:2 * H], m[3 * H:4 * H], m[2 * H:3 * H]],
                           axis=0)


def init_params(key, vocab_size, output_dim, embedding_dim, hidden_dim, n_layers):
    keys = jax.random.split(key, 3 + 4 * n_layers + 8)
    ki = iter(range(len(keys)))

    params = {"output_dim": output_dim}
    params["embedding"] = jax.random.normal(
        keys[next(ki)], (vocab_size, embedding_dim), jnp.float32)

    # LSTM layers (PyTorch init: uniform(-1/sqrt(H), 1/sqrt(H))), gates
    # reordered (i,f,g,o) -> (i,f,o,g) and stored transposed for x @ W.
    lstm_layers = []
    bound = 1.0 / math.sqrt(hidden_dim)
    for layer in range(n_layers):
        in_dim = embedding_dim if layer == 0 else hidden_dim
        w_ih = jax.random.uniform(keys[next(ki)], (4 * hidden_dim, in_dim),
                                  jnp.float32, -bound, bound)
        w_hh = jax.random.uniform(keys[next(ki)], (4 * hidden_dim, hidden_dim),
                                  jnp.float32, -bound, bound)
        b_ih = jax.random.uniform(keys[next(ki)], (4 * hidden_dim,),
                                  jnp.float32, -bound, bound)
        b_hh = jax.random.uniform(keys[next(ki)], (4 * hidden_dim,),
                                  jnp.float32, -bound, bound)
        w_ih = _reorder_gates(w_ih, hidden_dim)
        w_hh = _reorder_gates(w_hh, hidden_dim)
        b = _reorder_gates(b_ih + b_hh, hidden_dim)
        lstm_layers.append((w_ih.T, w_hh.T, b[None, :]))
    params["lstm"] = lstm_layers

    # FC stack: hidden_dim -> 64 -> 32 -> 16 -> output_dim (stored transposed).
    fc_dims = [(hidden_dim, 64), (64, 32), (32, 16), (16, output_dim)]
    fcs = []
    for (fan_in, fan_out) in fc_dims:
        fb = 1.0 / math.sqrt(fan_in)
        w = jax.random.uniform(keys[next(ki)], (fan_out, fan_in),
                               jnp.float32, -fb, fb)
        b = jax.random.uniform(keys[next(ki)], (fan_out,),
                               jnp.float32, -fb, fb)
        fcs.append((w.T, b[None, :]))
    params["fc"] = fcs
    return params


if __name__ == "__main__":
    # Small, module-consistent shapes.
    vocab_size = 50
    output_dim = 1
    embedding_dim = 16
    hidden_dim = 32
    n_layers = 2
    B, T = 2, 8

    key = jax.random.PRNGKey(0)
    pkey, xkey = jax.random.split(key)
    params = init_params(pkey, vocab_size, output_dim, embedding_dim,
                         hidden_dim, n_layers)

    x = jax.random.randint(xkey, (B, T), 0, vocab_size, dtype=jnp.int32)
    # init_hidden: zeros of shape [n_layers, B, hidden_dim].
    h0 = jnp.zeros((n_layers, B, hidden_dim), jnp.float32)
    c0 = jnp.zeros((n_layers, B, hidden_dim), jnp.float32)

    sig_out, (h_n, c_n) = sentiment_forward(params, x, (h0, c0))
    jax.block_until_ready((sig_out, h_n, c_n))

    assert sig_out.shape == (B,)
    assert h_n.shape == (n_layers, B, hidden_dim)
    assert c_n.shape == (n_layers, B, hidden_dim)
    assert bool(jnp.all(jnp.isfinite(sig_out)))
    assert bool(jnp.all(jnp.isfinite(h_n))) and bool(jnp.all(jnp.isfinite(c_n)))
    print("KERNEL_OK")
</pallas_src>

<mosaic_0001>
module attributes {stable_mosaic.version = 11 : i64} {
  func.func @kernel(%arg0: memref<64x1xi32, #tpu.memory_space<vmem>>, %arg1: memref<128x128xbf16, #tpu.memory_space<vmem>>, %arg2: memref<1x128xf32, #tpu.memory_space<vmem>>, %arg3: memref<32x128xf32, #tpu.memory_space<vmem>>, %arg4: memref<32x128xf32, #tpu.memory_space<vmem>>, %arg5: memref<32x128xf32, #tpu.memory_space<vmem>>, %arg6: memref<1x128xf32, #tpu.memory_space<vmem>>, %arg7: memref<2x8x32xf32, #tpu.memory_space<vmem>>, %arg8: memref<2x8x32xf32, #tpu.memory_space<vmem>>, %arg9: memref<32x128xf32, #tpu.memory_space<vmem>>, %arg10: memref<1x128xf32, #tpu.memory_space<vmem>>, %arg11: memref<8x128xf32, #tpu.memory_space<vmem>>, %arg12: memref<2x8x32xf32, #tpu.memory_space<vmem>>, %arg13: memref<2x8x32xf32, #tpu.memory_space<vmem>>) attributes {dimension_semantics = [], scalar_prefetch = 0 : i64, scratch_operands = 0 : i64, tpu.core_type = #tpu.core_type<tc>} {
    %c0 = arith.constant 0 : index
    %c0_0 = arith.constant 0 : index
    %0 = vector.load %arg0[%c0, %c0_0] : memref<64x1xi32, #tpu.memory_space<vmem>>, vector<64x1xi32>
    %1 = tpu.iota {dimensions = array<i32: 1>} : vector<64x128xi32>
    %2 = vector.broadcast %0 : vector<64x1xi32> to vector<64x128xi32>
    %3 = arith.cmpi eq, %1, %2 : vector<64x128xi32>
    %4 = arith.extui %3 : vector<64x128xi1> to vector<64x128xi32>
    %5 = arith.sitofp %4 : vector<64x128xi32> to vector<64x128xf32>
    %6 = arith.truncf %5 : vector<64x128xf32> to vector<64x128xbf16>
    %c0_1 = arith.constant 0 : index
    %c0_2 = arith.constant 0 : index
    %7 = vector.load %arg1[%c0_1, %c0_2] : memref<128x128xbf16, #tpu.memory_space<vmem>>, vector<128x128xbf16>
    %cst = arith.constant dense<0.000000e+00> : vector<64x128xf32>
    %8 = tpu.matmul %6, %7, %cst {dimension_numbers = #tpu.dot_dimension_numbers<[1], [0], [0], [1], [0, 0, 1, 1], [], []>} : vector<64x128xbf16>, vector<128x128xbf16>, vector<64x128xf32> -> vector<64x128xf32>
    %c0_3 = arith.constant 0 : index
    %c0_4 = arith.constant 0 : index
    %9 = vector.load %arg2[%c0_3, %c0_4] : memref<1x128xf32, #tpu.memory_space<vmem>>, vector<1x128xf32>
    %10 = vector.broadcast %9 : vector<1x128xf32> to vector<64x128xf32>
    %11 = arith.addf %8, %10 : vector<64x128xf32>
    %c0_5 = arith.constant 0 : index
    %c0_6 = arith.constant 0 : index
    %12 = vector.load %arg3[%c0_5, %c0_6] : memref<32x128xf32, #tpu.memory_space<vmem>>, vector<32x128xf32>
    %c0_7 = arith.constant 0 : index
    %c0_8 = arith.constant 0 : index
    %13 = vector.load %arg5[%c0_7, %c0_8] : memref<32x128xf32, #tpu.memory_space<vmem>>, vector<32x128xf32>
    %c0_9 = arith.constant 0 : index
    %c0_10 = arith.constant 0 : index
    %14 = vector.load %arg4[%c0_9, %c0_10] : memref<32x128xf32, #tpu.memory_space<vmem>>, vector<32x128xf32>
    %c0_11 = arith.constant 0 : index
    %c0_12 = arith.constant 0 : index
    %15 = vector.load %arg6[%c0_11, %c0_12] : memref<1x128xf32, #tpu.memory_space<vmem>>, vector<1x128xf32>
    %c0_13 = arith.constant 0 : index
    %c0_14 = arith.constant 0 : index
    %c0_15 = arith.constant 0 : index
    %16 = vector.load %arg7[%c0_13, %c0_14, %c0_15] : memref<2x8x32xf32, #tpu.memory_space<vmem>>, vector<1x8x32xf32>
    %17 = vector.shape_cast %16 : vector<1x8x32xf32> to vector<8x32xf32>
    %c1 = arith.constant 1 : index
    %c0_16 = arith.constant 0 : index
    %c0_17 = arith.constant 0 : index
    %18 = vector.load %arg7[%c1, %c0_16, %c0_17] : memref<2x8x32xf32, #tpu.memory_space<vmem>>, vector<1x8x32xf32>
    %19 = vector.shape_cast %18 : vector<1x8x32xf32> to vector<8x32xf32>
    %c0_18 = arith.constant 0 : index
    %c0_19 = arith.constant 0 : index
    %c0_20 = arith.constant 0 : index
    %20 = vector.load %arg8[%c0_18, %c0_19, %c0_20] : memref<2x8x32xf32, #tpu.memory_space<vmem>>, vector<1x8x32xf32>
    %21 = vector.shape_cast %20 : vector<1x8x32xf32> to vector<8x32xf32>
    %c1_21 = arith.constant 1 : index
    %c0_22 = arith.constant 0 : index
    %c0_23 = arith.constant 0 : index
    %22 = vector.load %arg8[%c1_21, %c0_22, %c0_23] : memref<2x8x32xf32, #tpu.memory_space<vmem>>, vector<1x8x32xf32>
    %23 = vector.shape_cast %22 : vector<1x8x32xf32> to vector<8x32xf32>
    %24 = vector.extract_strided_slice %11 {offsets = [0, 0], sizes = [8, 128], strides = [1, 1]} : vector<64x128xf32> to vector<8x128xf32>
    %cst_24 = arith.constant dense<0.000000e+00> : vector<8x128xf32>
    %25 = tpu.matmul %17, %12, %cst_24 {dimension_numbers = #tpu.dot_dimension_numbers<[1], [0], [0], [1], [0, 0, 1, 1], [], []>} : vector<8x32xf32>, vector<32x128xf32>, vector<8x128xf32> -> vector<8x128xf32>
    %26 = arith.addf %24, %25 : vector<8x128xf32>
    %27 = vector.extract_strided_slice %26 {offsets = [0, 0], sizes = [8, 96], strides = [1, 1]} : vector<8x128xf32> to vector<8x96xf32>
    %28 = arith.negf %27 : vector<8x96xf32>
    %29 = math.exp %28 : vector<8x96xf32>
    %cst_25 = arith.constant 1.000000e+00 : f32
    %30 = vector.broadcast %cst_25 : f32 to vector<8x96xf32>
    %31 = arith.addf %30, %29 : vector<8x96xf32>
    %32 = arith.divf %30, %31 : vector<8x96xf32>
    %33 = vector.extract_strided_slice %26 {offsets = [0, 96], sizes = [8, 32], strides = [1, 1]} : vector<8x128xf32> to vector<8x32xf32>
    %34 = math.tanh %33 : vector<8x32xf32>
    %35 = vector.extract_strided_slice %32 {offsets = [0, 0], sizes = [8, 32], strides = [1, 1]} : vector<8x96xf32> to vector<8x32xf32>
    %36 = vector.extract_strided_slice %32 {offsets = [0, 32], sizes = [8, 32], strides = [1, 1]} : vector<8x96xf32> to vector<8x32xf32>
    %37 = vector.extract_strided_slice %32 {offsets = [0, 64], sizes = [8, 32], strides = [1, 1]} : vector<8x96xf32> to vector<8x32xf32>
    %38 = arith.mulf %36, %21 : vector<8x32xf32>
    %39 = arith.mulf %35, %34 : vector<8x32xf32>
    %40 = arith.addf %38, %39 : vector<8x32xf32>
    %41 = math.tanh %40 : vector<8x32xf32>
    %42 = arith.mulf %37, %41 : vector<8x32xf32>
    %cst_26 = arith.constant dense<0.000000e+00> : vector<8x128xf32>
    %43 = tpu.matmul %42, %14, %cst_26 {dimension_numbers = #tpu.dot_dimension_numbers<[1], [0], [0], [1], [0, 0, 1, 1], [], []>} : vector<8x32xf32>, vector<32x128xf32>, vector<8x128xf32> -> vector<8x128xf32>
    %cst_27 = arith.constant dense<0.000000e+00> : vector<8x128xf32>
    %44 = tpu.matmul %19, %13, %cst_27 {dimension_numbers = #tpu.dot_dimension_numbers<[1], [0], [0], [1], [0, 0, 1, 1], [], []>} : vector<8x32xf32>, vector<32x128xf32>, vector<8x128xf32> -> vector<8x128xf32>
    %45 = arith.addf %43, %44 : vector<8x128xf32>
    %46 = vector.broadcast %15 : vector<1x128xf32> to vector<8x128xf32>
    %47 = arith.addf %45, %46 : vector<8x128xf32>
    %48 = vector.extract_strided_slice %47 {offsets = [0, 0], sizes = [8, 96], strides = [1, 1]} : vector<8x128xf32> to vector<8x96xf32>
    %49 = arith.negf %48 : vector<8x96xf32>
    %50 = math.exp %49 : vector<8x96xf32>
    %cst_28 = arith.constant 1.000000e+00 : f32
    %51 = vector.broadcast %cst_28 : f32 to vector<8x96xf32>
    %52 = arith.addf %51, %50 : vector<8x96xf32>
    %53 = arith.divf %51, %52 : vector<8x96xf32>
    %54 = vector.extract_strided_slice %47 {offsets = [0, 96], sizes = [8, 32], strides = [1, 1]} : vector<8x128xf32> to vector<8x32xf32>
    %55 = math.tanh %54 : vector<8x32xf32>
    %56 = vector.extract_strided_slice %53 {offsets = [0, 0], sizes = [8, 32], strides = [1, 1]} : vector<8x96xf32> to vector<8x32xf32>
    %57 = vector.extract_strided_slice %53 {offsets = [0, 32], sizes = [8, 32], strides = [1, 1]} : vector<8x96xf32> to vector<8x32xf32>
    %58 = vector.extract_strided_slice %53 {offsets = [0, 64], sizes = [8, 32], strides = [1, 1]} : vector<8x96xf32> to vector<8x32xf32>
    %59 = arith.mulf %57, %23 : vector<8x32xf32>
    %60 = arith.mulf %56, %55 : vector<8x32xf32>
    %61 = arith.addf %59, %60 : vector<8x32xf32>
    %62 = math.tanh %61 : vector<8x32xf32>
    %63 = arith.mulf %58, %62 : vector<8x32xf32>
    %64 = vector.extract_strided_slice %11 {offsets = [8, 0], sizes = [8, 128], strides = [1, 1]} : vector<64x128xf32> to vector<8x128xf32>
    %cst_29 = arith.constant dense<0.000000e+00> : vector<8x128xf32>
    %65 = tpu.matmul %42, %12, %cst_29 {dimension_numbers = #tpu.dot_dimension_numbers<[1], [0], [0], [1], [0, 0, 1, 1], [], []>} : vector<8x32xf32>, vector<32x128xf32>, vector<8x128xf32> -> vector<8x128xf32>
    %66 = arith.addf %64, %65 : vector<8x128xf32>
    %67 = vector.extract_strided_slice %66 {offsets = [0, 0], sizes = [8, 96], strides = [1, 1]} : vector<8x128xf32> to vector<8x96xf32>
    %68 = arith.negf %67 : vector<8x96xf32>
    %69 = math.exp %68 : vector<8x96xf32>
    %cst_30 = arith.constant 1.000000e+00 : f32
    %70 = vector.broadcast %cst_30 : f32 to vector<8x96xf32>
    %71 = arith.addf %70, %69 : vector<8x96xf32>
    %72 = arith.divf %70, %71 : vector<8x96xf32>
    %73 = vector.extract_strided_slice %66 {offsets = [0, 96], sizes = [8, 32], strides = [1, 1]} : vector<8x128xf32> to vector<8x32xf32>
    %74 = math.tanh %73 : vector<8x32xf32>
    %75 = vector.extract_strided_slice %72 {offsets = [0, 0], sizes = [8, 32], strides = [1, 1]} : vector<8x96xf32> to vector<8x32xf32>
    %76 = vector.extract_strided_slice %72 {offsets = [0, 32], sizes = [8, 32], strides = [1, 1]} : vector<8x96xf32> to vector<8x32xf32>
    %77 = vector.extract_strided_slice %72 {offsets = [0, 64], sizes = [8, 32], strides = [1, 1]} : vector<8x96xf32> to vector<8x32xf32>
    %78 = arith.mulf %76, %40 : vector<8x32xf32>
    %79 = arith.mulf %75, %74 : vector<8x32xf32>
    %80 = arith.addf %78, %79 : vector<8x32xf32>
    %81 = math.tanh %80 : vector<8x32xf32>
    %82 = arith.mulf %77, %81 : vector<8x32xf32>
    %cst_31 = arith.constant dense<0.000000e+00> : vector<8x128xf32>
    %83 = tpu.matmul %82, %14, %cst_31 {dimension_numbers = #tpu.dot_dimension_numbers<[1], [0], [0], [1], [0, 0, 1, 1], [], []>} : vector<8x32xf32>, vector<32x128xf32>, vector<8x128xf32> -> vector<8x128xf32>
    %cst_32 = arith.constant dense<0.000000e+00> : vector<8x128xf32>
    %84 = tpu.matmul %63, %13, %cst_32 {dimension_numbers = #tpu.dot_dimension_numbers<[1], [0], [0], [1], [0, 0, 1, 1], [], []>} : vector<8x32xf32>, vector<32x128xf32>, vector<8x128xf32> -> vector<8x128xf32>
    %85 = arith.addf %83, %84 : vector<8x128xf32>
    %86 = vector.broadcast %15 : vector<1x128xf32> to vector<8x128xf32>
    %87 = arith.addf %85, %86 : vector<8x128xf32>
    %88 = vector.extract_strided_slice %87 {offsets = [0, 0], sizes = [8, 96], strides = [1, 1]} : vector<8x128xf32> to vector<8x96xf32>
    %89 = arith.negf %88 : vector<8x96xf32>
    %90 = math.exp %89 : vector<8x96xf32>
    %cst_33 = arith.constant 1.000000e+00 : f32
    %91 = vector.broadcast %cst_33 : f32 to vector<8x96xf32>
    %92 = arith.addf %91, %90 : vector<8x96xf32>
    %93 = arith.divf %91, %92 : vector<8x96xf32>
    %94 = vector.extract_strided_slice %87 {offsets = [0, 96], sizes = [8, 32], strides = [1, 1]} : vector<8x128xf32> to vector<8x32xf32>
    %95 = math.tanh %94 : vector<8x32xf32>
    %96 = vector.extract_strided_slice %93 {offsets = [0, 0], sizes = [8, 32], strides = [1, 1]} : vector<8x96xf32> to vector<8x32xf32>
    %97 = vector.extract_strided_slice %93 {offsets = [0, 32], sizes = [8, 32], strides = [1, 1]} : vector<8x96xf32> to vector<8x32xf32>
    %98 = vector.extract_strided_slice %93 {offsets = [0, 64], sizes = [8, 32], strides = [1, 1]} : vector<8x96xf32> to vector<8x32xf32>
    %99 = arith.mulf %97, %61 : vector<8x32xf32>
    %100 = arith.mulf %96, %95 : vector<8x32xf32>
    %101 = arith.addf %99, %100 : vector<8x32xf32>
    %102 = math.tanh %101 : vector<8x32xf32>
    %103 = arith.mulf %98, %102 : vector<8x32xf32>
    %104 = vector.extract_strided_slice %11 {offsets = [16, 0], sizes = [8, 128], strides = [1, 1]} : vector<64x128xf32> to vector<8x128xf32>
    %cst_34 = arith.constant dense<0.000000e+00> : vector<8x128xf32>
    %105 = tpu.matmul %82, %12, %cst_34 {dimension_numbers = #tpu.dot_dimension_numbers<[1], [0], [0], [1], [0, 0, 1, 1], [], []>} : vector<8x32xf32>, vector<32x128xf32>, vector<8x128xf32> -> vector<8x128xf32>
    %106 = arith.addf %104, %105 : vector<8x128xf32>
    %107 = vector.extract_strided_slice %106 {offsets = [0, 0], sizes = [8, 96], strides = [1, 1]} : vector<8x128xf32> to vector<8x96xf32>
    %108 = arith.negf %107 : vector<8x96xf32>
    %109 = math.exp %108 : vector<8x96xf32>
    %cst_35 = arith.constant 1.000000e+00 : f32
    %110 = vector.broadcast %cst_35 : f32 to vector<8x96xf32>
    %111 = arith.addf %110, %109 : vector<8x96xf32>
    %112 = arith.divf %110, %111 : vector<8x96xf32>
    %113 = vector.extract_strided_slice %106 {offsets = [0, 96], sizes = [8, 32], strides = [1, 1]} : vector<8x128xf32> to vector<8x32xf32>
    %114 = math.tanh %113 : vector<8x32xf32>
    %115 = vector.extract_strided_slice %112 {offsets = [0, 0], sizes = [8, 32], strides = [1, 1]} : vector<8x96xf32> to vector<8x32xf32>
    %116 = vector.extract_strided_slice %112 {offsets = [0, 32], sizes = [8, 32], strides = [1, 1]} : vector<8x96xf32> to vector<8x32xf32>
    %117 = vector.extract_strided_slice %112 {offsets = [0, 64], sizes = [8, 32], strides = [1, 1]} : vector<8x96xf32> to vector<8x32xf32>
    %118 = arith.mulf %116, %80 : vector<8x32xf32>
    %119 = arith.mulf %115, %114 : vector<8x32xf32>
    %120 = arith.addf %118, %119 : vector<8x32xf32>
    %121 = math.tanh %120 : vector<8x32xf32>
    %122 = arith.mulf %117, %121 : vector<8x32xf32>
    %cst_36 = arith.constant dense<0.000000e+00> : vector<8x128xf32>
    %123 = tpu.matmul %122, %14, %cst_36 {dimension_numbers = #tpu.dot_dimension_numbers<[1], [0], [0], [1], [0, 0, 1, 1], [], []>} : vector<8x32xf32>, vector<32x128xf32>, vector<8x128xf32> -> vector<8x128xf32>
    %cst_37 = arith.constant dense<0.000000e+00> : vector<8x128xf32>
    %124 = tpu.matmul %103, %13, %cst_37 {dimension_numbers = #tpu.dot_dimension_numbers<[1], [0], [0], [1], [0, 0, 1, 1], [], []>} : vector<8x32xf32>, vector<32x128xf32>, vector<8x128xf32> -> vector<8x128xf32>
    %125 = arith.addf %123, %124 : vector<8x128xf32>
    %126 = vector.broadcast %15 : vector<1x128xf32> to vector<8x128xf32>
    %127 = arith.addf %125, %126 : vector<8x128xf32>
    %128 = vector.extract_strided_slice %127 {offsets = [0, 0], sizes = [8, 96], strides = [1, 1]} : vector<8x128xf32> to vector<8x96xf32>
    %129 = arith.negf %128 : vector<8x96xf32>
    %130 = math.exp %129 : vector<8x96xf32>
    %cst_38 = arith.constant 1.000000e+00 : f32
    %131 = vector.broadcast %cst_38 : f32 to vector<8x96xf32>
    %132 = arith.addf %131, %130 : vector<8x96xf32>
    %133 = arith.divf %131, %132 : vector<8x96xf32>
    %134 = vector.extract_strided_slice %127 {offsets = [0, 96], sizes = [8, 32], strides = [1, 1]} : vector<8x128xf32> to vector<8x32xf32>
    %135 = math.tanh %134 : vector<8x32xf32>
    %136 = vector.extract_strided_slice %133 {offsets = [0, 0], sizes = [8, 32], strides = [1, 1]} : vector<8x96xf32> to vector<8x32xf32>
    %137 = vector.extract_strided_slice %133 {offsets = [0, 32], sizes = [8, 32], strides = [1, 1]} : vector<8x96xf32> to vector<8x32xf32>
    %138 = vector.extract_strided_slice %133 {offsets = [0, 64], sizes = [8, 32], strides = [1, 1]} : vector<8x96xf32> to vector<8x32xf32>
    %139 = arith.mulf %137, %101 : vector<8x32xf32>
    %140 = arith.mulf %136, %135 : vector<8x32xf32>
    %141 = arith.addf %139, %140 : vector<8x32xf32>
    %142 = math.tanh %141 : vector<8x32xf32>
    %143 = arith.mulf %138, %142 : vector<8x32xf32>
    %144 = vector.extract_strided_slice %11 {offsets = [24, 0], sizes = [8, 128], strides = [1, 1]} : vector<64x128xf32> to vector<8x128xf32>
    %cst_39 = arith.constant dense<0.000000e+00> : vector<8x128xf32>
    %145 = tpu.matmul %122, %12, %cst_39 {dimension_numbers = #tpu.dot_dimension_numbers<[1], [0], [0], [1], [0, 0, 1, 1], [], []>} : vector<8x32xf32>, vector<32x128xf32>, vector<8x128xf32> -> vector<8x128xf32>
    %146 = arith.addf %144, %145 : vector<8x128xf32>
    %147 = vector.extract_strided_slice %146 {offsets = [0, 0], sizes = [8, 96], strides = [1, 1]} : vector<8x128xf32> to vector<8x96xf32>
    %148 = arith.negf %147 : vector<8x96xf32>
    %149 = math.exp %148 : vector<8x96xf32>
    %cst_40 = arith.constant 1.000000e+00 : f32
    %150 = vector.broadcast %cst_40 : f32 to vector<8x96xf32>
    %151 = arith.addf %150, %149 : vector<8x96xf32>
    %152 = arith.divf %150, %151 : vector<8x96xf32>
    %153 = vector.extract_strided_slice %146 {offsets = [0, 96], sizes = [8, 32], strides = [1, 1]} : vector<8x128xf32> to vector<8x32xf32>
    %154 = math.tanh %153 : vector<8x32xf32>
    %155 = vector.extract_strided_slice %152 {offsets = [0, 0], sizes = [8, 32], strides = [1, 1]} : vector<8x96xf32> to vector<8x32xf32>
    %156 = vector.extract_strided_slice %152 {offsets = [0, 32], sizes = [8, 32], strides = [1, 1]} : vector<8x96xf32> to vector<8x32xf32>
    %157 = vector.extract_strided_slice %152 {offsets = [0, 64], sizes = [8, 32], strides = [1, 1]} : vector<8x96xf32> to vector<8x32xf32>
    %158 = arith.mulf %156, %120 : vector<8x32xf32>
    %159 = arith.mulf %155, %154 : vector<8x32xf32>
    %160 = arith.addf %158, %159 : vector<8x32xf32>
    %161 = math.tanh %160 : vector<8x32xf32>
    %162 = arith.mulf %157, %161 : vector<8x32xf32>
    %cst_41 = arith.constant dense<0.000000e+00> : vector<8x128xf32>
    %163 = tpu.matmul %162, %14, %cst_41 {dimension_numbers = #tpu.dot_dimension_numbers<[1], [0], [0], [1], [0, 0, 1, 1], [], []>} : vector<8x32xf32>, vector<32x128xf32>, vector<8x128xf32> -> vector<8x128xf32>
    %cst_42 = arith.constant dense<0.000000e+00> : vector<8x128xf32>
    %164 = tpu.matmul %143, %13, %cst_42 {dimension_numbers = #tpu.dot_dimension_numbers<[1], [0], [0], [1], [0, 0, 1, 1], [], []>} : vector<8x32xf32>, vector<32x128xf32>, vector<8x128xf32> -> vector<8x128xf32>
    %165 = arith.addf %163, %164 : vector<8x128xf32>
    %166 = vector.broadcast %15 : vector<1x128xf32> to vector<8x128xf32>
    %167 = arith.addf %165, %166 : vector<8x128xf32>
    %168 = vector.extract_strided_slice %167 {offsets = [0, 0], sizes = [8, 96], strides = [1, 1]} : vector<8x128xf32> to vector<8x96xf32>
    %169 = arith.negf %168 : vector<8x96xf32>
    %170 = math.exp %169 : vector<8x96xf32>
    %cst_43 = arith.constant 1.000000e+00 : f32
    %171 = vector.broadcast %cst_43 : f32 to vector<8x96xf32>
    %172 = arith.addf %171, %170 : vector<8x96xf32>
    %173 = arith.divf %171, %172 : vector<8x96xf32>
    %174 = vector.extract_strided_slice %167 {offsets = [0, 96], sizes = [8, 32], strides = [1, 1]} : vector<8x128xf32> to vector<8x32xf32>
    %175 = math.tanh %174 : vector<8x32xf32>
    %176 = vector.extract_strided_slice %173 {offsets = [0, 0], sizes = [8, 32], strides = [1, 1]} : vector<8x96xf32> to vector<8x32xf32>
    %177 = vector.extract_strided_slice %173 {offsets = [0, 32], sizes = [8, 32], strides = [1, 1]} : vector<8x96xf32> to vector<8x32xf32>
    %178 = vector.extract_strided_slice %173 {offsets = [0, 64], sizes = [8, 32], strides = [1, 1]} : vector<8x96xf32> to vector<8x32xf32>
    %179 = arith.mulf %177, %141 : vector<8x32xf32>
    %180 = arith.mulf %176, %175 : vector<8x32xf32>
    %181 = arith.addf %179, %180 : vector<8x32xf32>
    %182 = math.tanh %181 : vector<8x32xf32>
    %183 = arith.mulf %178, %182 : vector<8x32xf32>
    %184 = vector.extract_strided_slice %11 {offsets = [32, 0], sizes = [8, 128], strides = [1, 1]} : vector<64x128xf32> to vector<8x128xf32>
    %cst_44 = arith.constant dense<0.000000e+00> : vector<8x128xf32>
    %185 = tpu.matmul %162, %12, %cst_44 {dimension_numbers = #tpu.dot_dimension_numbers<[1], [0], [0], [1], [0, 0, 1, 1], [], []>} : vector<8x32xf32>, vector<32x128xf32>, vector<8x128xf32> -> vector<8x128xf32>
    %186 = arith.addf %184, %185 : vector<8x128xf32>
    %187 = vector.extract_strided_slice %186 {offsets = [0, 0], sizes = [8, 96], strides = [1, 1]} : vector<8x128xf32> to vector<8x96xf32>
    %188 = arith.negf %187 : vector<8x96xf32>
    %189 = math.exp %188 : vector<8x96xf32>
    %cst_45 = arith.constant 1.000000e+00 : f32
    %190 = vector.broadcast %cst_45 : f32 to vector<8x96xf32>
    %191 = arith.addf %190, %189 : vector<8x96xf32>
    %192 = arith.divf %190, %191 : vector<8x96xf32>
    %193 = vector.extract_strided_slice %186 {offsets = [0, 96], sizes = [8, 32], strides = [1, 1]} : vector<8x128xf32> to vector<8x32xf32>
    %194 = math.tanh %193 : vector<8x32xf32>
    %195 = vector.extract_strided_slice %192 {offsets = [0, 0], sizes = [8, 32], strides = [1, 1]} : vector<8x96xf32> to vector<8x32xf32>
    %196 = vector.extract_strided_slice %192 {offsets = [0, 32], sizes = [8, 32], strides = [1, 1]} : vector<8x96xf32> to vector<8x32xf32>
    %197 = vector.extract_strided_slice %192 {offsets = [0, 64], sizes = [8, 32], strides = [1, 1]} : vector<8x96xf32> to vector<8x32xf32>
    %198 = arith.mulf %196, %160 : vector<8x32xf32>
    %199 = arith.mulf %195, %194 : vector<8x32xf32>
    %200 = arith.addf %198, %199 : vector<8x32xf32>
    %201 = math.tanh %200 : vector<8x32xf32>
    %202 = arith.mulf %197, %201 : vector<8x32xf32>
    %cst_46 = arith.constant dense<0.000000e+00> : vector<8x128xf32>
    %203 = tpu.matmul %202, %14, %cst_46 {dimension_numbers = #tpu.dot_dimension_numbers<[1], [0], [0], [1], [0, 0, 1, 1], [], []>} : vector<8x32xf32>, vector<32x128xf32>, vector<8x128xf32> -> vector<8x128xf32>
    %cst_47 = arith.constant dense<0.000000e+00> : vector<8x128xf32>
    %204 = tpu.matmul %183, %13, %cst_47 {dimension_numbers = #tpu.dot_dimension_numbers<[1], [0], [0], [1], [0, 0, 1, 1], [], []>} : vector<8x32xf32>, vector<32x128xf32>, vector<8x128xf32> -> vector<8x128xf32>
    %205 = arith.addf %203, %204 : vector<8x128xf32>
    %206 = vector.broadcast %15 : vector<1x128xf32> to vector<8x128xf32>
    %207 = arith.addf %205, %206 : vector<8x128xf32>
    %208 = vector.extract_strided_slice %207 {offsets = [0, 0], sizes = [8, 96], strides = [1, 1]} : vector<8x128xf32> to vector<8x96xf32>
    %209 = arith.negf %208 : vector<8x96xf32>
    %210 = math.exp %209 : vector<8x96xf32>
    %cst_48 = arith.constant 1.000000e+00 : f32
    %211 = vector.broadcast %cst_48 : f32 to vector<8x96xf32>
    %212 = arith.addf %211, %210 : vector<8x96xf32>
    %213 = arith.divf %211, %212 : vector<8x96xf32>
    %214 = vector.extract_strided_slice %207 {offsets = [0, 96], sizes = [8, 32], strides = [1, 1]} : vector<8x128xf32> to vector<8x32xf32>
    %215 = math.tanh %214 : vector<8x32xf32>
    %216 = vector.extract_strided_slice %213 {offsets = [0, 0], sizes = [8, 32], strides = [1, 1]} : vector<8x96xf32> to vector<8x32xf32>
    %217 = vector.extract_strided_slice %213 {offsets = [0, 32], sizes = [8, 32], strides = [1, 1]} : vector<8x96xf32> to vector<8x32xf32>
    %218 = vector.extract_strided_slice %213 {offsets = [0, 64], sizes = [8, 32], strides = [1, 1]} : vector<8x96xf32> to vector<8x32xf32>
    %219 = arith.mulf %217, %181 : vector<8x32xf32>
    %220 = arith.mulf %216, %215 : vector<8x32xf32>
    %221 = arith.addf %219, %220 : vector<8x32xf32>
    %222 = math.tanh %221 : vector<8x32xf32>
    %223 = arith.mulf %218, %222 : vector<8x32xf32>
    %224 = vector.extract_strided_slice %11 {offsets = [40, 0], sizes = [8, 128], strides = [1, 1]} : vector<64x128xf32> to vector<8x128xf32>
    %cst_49 = arith.constant dense<0.000000e+00> : vector<8x128xf32>
    %225 = tpu.matmul %202, %12, %cst_49 {dimension_numbers = #tpu.dot_dimension_numbers<[1], [0], [0], [1], [0, 0, 1, 1], [], []>} : vector<8x32xf32>, vector<32x128xf32>, vector<8x128xf32> -> vector<8x128xf32>
    %226 = arith.addf %224, %225 : vector<8x128xf32>
    %227 = vector.extract_strided_slice %226 {offsets = [0, 0], sizes = [8, 96], strides = [1, 1]} : vector<8x128xf32> to vector<8x96xf32>
    %228 = arith.negf %227 : vector<8x96xf32>
    %229 = math.exp %228 : vector<8x96xf32>
    %cst_50 = arith.constant 1.000000e+00 : f32
    %230 = vector.broadcast %cst_50 : f32 to vector<8x96xf32>
    %231 = arith.addf %230, %229 : vector<8x96xf32>
    %232 = arith.divf %230, %231 : vector<8x96xf32>
    %233 = vector.extract_strided_slice %226 {offsets = [0, 96], sizes = [8, 32], strides = [1, 1]} : vector<8x128xf32> to vector<8x32xf32>
    %234 = math.tanh %233 : vector<8x32xf32>
    %235 = vector.extract_strided_slice %232 {offsets = [0, 0], sizes = [8, 32], strides = [1, 1]} : vector<8x96xf32> to vector<8x32xf32>
    %236 = vector.extract_strided_slice %232 {offsets = [0, 32], sizes = [8, 32], strides = [1, 1]} : vector<8x96xf32> to vector<8x32xf32>
    %237 = vector.extract_strided_slice %232 {offsets = [0, 64], sizes = [8, 32], strides = [1, 1]} : vector<8x96xf32> to vector<8x32xf32>
    %238 = arith.mulf %236, %200 : vector<8x32xf32>
    %239 = arith.mulf %235, %234 : vector<8x32xf32>
    %240 = arith.addf %238, %239 : vector<8x32xf32>
    %241 = math.tanh %240 : vector<8x32xf32>
    %242 = arith.mulf %237, %241 : vector<8x32xf32>
    %cst_51 = arith.constant dense<0.000000e+00> : vector<8x128xf32>
    %243 = tpu.matmul %242, %14, %cst_51 {dimension_numbers = #tpu.dot_dimension_numbers<[1], [0], [0], [1], [0, 0, 1, 1], [], []>} : vector<8x32xf32>, vector<32x128xf32>, vector<8x128xf32> -> vector<8x128xf32>
    %cst_52 = arith.constant dense<0.000000e+00> : vector<8x128xf32>
    %244 = tpu.matmul %223, %13, %cst_52 {dimension_numbers = #tpu.dot_dimension_numbers<[1], [0], [0], [1], [0, 0, 1, 1], [], []>} : vector<8x32xf32>, vector<32x128xf32>, vector<8x128xf32> -> vector<8x128xf32>
    %245 = arith.addf %243, %244 : vector<8x128xf32>
    %246 = vector.broadcast %15 : vector<1x128xf32> to vector<8x128xf32>
    %247 = arith.addf %245, %246 : vector<8x128xf32>
    %248 = vector.extract_strided_slice %247 {offsets = [0, 0], sizes = [8, 96], strides = [1, 1]} : vector<8x128xf32> to vector<8x96xf32>
    %249 = arith.negf %248 : vector<8x96xf32>
    %250 = math.exp %249 : vector<8x96xf32>
    %cst_53 = arith.constant 1.000000e+00 : f32
    %251 = vector.broadcast %cst_53 : f32 to vector<8x96xf32>
    %252 = arith.addf %251, %250 : vector<8x96xf32>
    %253 = arith.divf %251, %252 : vector<8x96xf32>
    %254 = vector.extract_strided_slice %247 {offsets = [0, 96], sizes = [8, 32], strides = [1, 1]} : vector<8x128xf32> to vector<8x32xf32>
    %255 = math.tanh %254 : vector<8x32xf32>
    %256 = vector.extract_strided_slice %253 {offsets = [0, 0], sizes = [8, 32], strides = [1, 1]} : vector<8x96xf32> to vector<8x32xf32>
    %257 = vector.extract_strided_slice %253 {offsets = [0, 32], sizes = [8, 32], strides = [1, 1]} : vector<8x96xf32> to vector<8x32xf32>
    %258 = vector.extract_strided_slice %253 {offsets = [0, 64], sizes = [8, 32], strides = [1, 1]} : vector<8x96xf32> to vector<8x32xf32>
    %259 = arith.mulf %257, %221 : vector<8x32xf32>
    %260 = arith.mulf %256, %255 : vector<8x32xf32>
    %261 = arith.addf %259, %260 : vector<8x32xf32>
    %262 = math.tanh %261 : vector<8x32xf32>
    %263 = arith.mulf %258, %262 : vector<8x32xf32>
    %264 = vector.extract_strided_slice %11 {offsets = [48, 0], sizes = [8, 128], strides = [1, 1]} : vector<64x128xf32> to vector<8x128xf32>
    %cst_54 = arith.constant dense<0.000000e+00> : vector<8x128xf32>
    %265 = tpu.matmul %242, %12, %cst_54 {dimension_numbers = #tpu.dot_dimension_numbers<[1], [0], [0], [1], [0, 0, 1, 1], [], []>} : vector<8x32xf32>, vector<32x128xf32>, vector<8x128xf32> -> vector<8x128xf32>
    %266 = arith.addf %264, %265 : vector<8x128xf32>
    %267 = vector.extract_strided_slice %266 {offsets = [0, 0], sizes = [8, 96], strides = [1, 1]} : vector<8x128xf32> to vector<8x96xf32>
    %268 = arith.negf %267 : vector<8x96xf32>
    %269 = math.exp %268 : vector<8x96xf32>
    %cst_55 = arith.constant 1.000000e+00 : f32
    %270 = vector.broadcast %cst_55 : f32 to vector<8x96xf32>
    %271 = arith.addf %270, %269 : vector<8x96xf32>
    %272 = arith.divf %270, %271 : vector<8x96xf32>
    %273 = vector.extract_strided_slice %266 {offsets = [0, 96], sizes = [8, 32], strides = [1, 1]} : vector<8x128xf32> to vector<8x32xf32>
    %274 = math.tanh %273 : vector<8x32xf32>
    %275 = vector.extract_strided_slice %272 {offsets = [0, 0], sizes = [8, 32], strides = [1, 1]} : vector<8x96xf32> to vector<8x32xf32>
    %276 = vector.extract_strided_slice %272 {offsets = [0, 32], sizes = [8, 32], strides = [1, 1]} : vector<8x96xf32> to vector<8x32xf32>
    %277 = vector.extract_strided_slice %272 {offsets = [0, 64], sizes = [8, 32], strides = [1, 1]} : vector<8x96xf32> to vector<8x32xf32>
    %278 = arith.mulf %276, %240 : vector<8x32xf32>
    %279 = arith.mulf %275, %274 : vector<8x32xf32>
    %280 = arith.addf %278, %279 : vector<8x32xf32>
    %281 = math.tanh %280 : vector<8x32xf32>
    %282 = arith.mulf %277, %281 : vector<8x32xf32>
    %cst_56 = arith.constant dense<0.000000e+00> : vector<8x128xf32>
    %283 = tpu.matmul %282, %14, %cst_56 {dimension_numbers = #tpu.dot_dimension_numbers<[1], [0], [0], [1], [0, 0, 1, 1], [], []>} : vector<8x32xf32>, vector<32x128xf32>, vector<8x128xf32> -> vector<8x128xf32>
    %cst_57 = arith.constant dense<0.000000e+00> : vector<8x128xf32>
    %284 = tpu.matmul %263, %13, %cst_57 {dimension_numbers = #tpu.dot_dimension_numbers<[1], [0], [0], [1], [0, 0, 1, 1], [], []>} : vector<8x32xf32>, vector<32x128xf32>, vector<8x128xf32> -> vector<8x128xf32>
    %285 = arith.addf %283, %284 : vector<8x128xf32>
    %286 = vector.broadcast %15 : vector<1x128xf32> to vector<8x128xf32>
    %287 = arith.addf %285, %286 : vector<8x128xf32>
    %288 = vector.extract_strided_slice %287 {offsets = [0, 0], sizes = [8, 96], strides = [1, 1]} : vector<8x128xf32> to vector<8x96xf32>
    %289 = arith.negf %288 : vector<8x96xf32>
    %290 = math.exp %289 : vector<8x96xf32>
    %cst_58 = arith.constant 1.000000e+00 : f32
    %291 = vector.broadcast %cst_58 : f32 to vector<8x96xf32>
    %292 = arith.addf %291, %290 : vector<8x96xf32>
    %293 = arith.divf %291, %292 : vector<8x96xf32>
    %294 = vector.extract_strided_slice %287 {offsets = [0, 96], sizes = [8, 32], strides = [1, 1]} : vector<8x128xf32> to vector<8x32xf32>
    %295 = math.tanh %294 : vector<8x32xf32>
    %296 = vector.extract_strided_slice %293 {offsets = [0, 0], sizes = [8, 32], strides = [1, 1]} : vector<8x96xf32> to vector<8x32xf32>
    %297 = vector.extract_strided_slice %293 {offsets = [0, 32], sizes = [8, 32], strides = [1, 1]} : vector<8x96xf32> to vector<8x32xf32>
    %298 = vector.extract_strided_slice %293 {offsets = [0, 64], sizes = [8, 32], strides = [1, 1]} : vector<8x96xf32> to vector<8x32xf32>
    %299 = arith.mulf %297, %261 : vector<8x32xf32>
    %300 = arith.mulf %296, %295 : vector<8x32xf32>
    %301 = arith.addf %299, %300 : vector<8x32xf32>
    %302 = math.tanh %301 : vector<8x32xf32>
    %303 = arith.mulf %298, %302 : vector<8x32xf32>
    %304 = vector.extract_strided_slice %11 {offsets = [56, 0], sizes = [8, 128], strides = [1, 1]} : vector<64x128xf32> to vector<8x128xf32>
    %cst_59 = arith.constant dense<0.000000e+00> : vector<8x128xf32>
    %305 = tpu.matmul %282, %12, %cst_59 {dimension_numbers = #tpu.dot_dimension_numbers<[1], [0], [0], [1], [0, 0, 1, 1], [], []>} : vector<8x32xf32>, vector<32x128xf32>, vector<8x128xf32> -> vector<8x128xf32>
    %306 = arith.addf %304, %305 : vector<8x128xf32>
    %307 = vector.extract_strided_slice %306 {offsets = [0, 0], sizes = [8, 96], strides = [1, 1]} : vector<8x128xf32> to vector<8x96xf32>
    %308 = arith.negf %307 : vector<8x96xf32>
    %309 = math.exp %308 : vector<8x96xf32>
    %cst_60 = arith.constant 1.000000e+00 : f32
    %310 = vector.broadcast %cst_60 : f32 to vector<8x96xf32>
    %311 = arith.addf %310, %309 : vector<8x96xf32>
    %312 = arith.divf %310, %311 : vector<8x96xf32>
    %313 = vector.extract_strided_slice %306 {offsets = [0, 96], sizes = [8, 32], strides = [1, 1]} : vector<8x128xf32> to vector<8x32xf32>
    %314 = math.tanh %313 : vector<8x32xf32>
    %315 = vector.extract_strided_slice %312 {offsets = [0, 0], sizes = [8, 32], strides = [1, 1]} : vector<8x96xf32> to vector<8x32xf32>
    %316 = vector.extract_strided_slice %312 {offsets = [0, 32], sizes = [8, 32], strides = [1, 1]} : vector<8x96xf32> to vector<8x32xf32>
    %317 = vector.extract_strided_slice %312 {offsets = [0, 64], sizes = [8, 32], strides = [1, 1]} : vector<8x96xf32> to vector<8x32xf32>
    %318 = arith.mulf %316, %280 : vector<8x32xf32>
    %319 = arith.mulf %315, %314 : vector<8x32xf32>
    %320 = arith.addf %318, %319 : vector<8x32xf32>
    %321 = math.tanh %320 : vector<8x32xf32>
    %322 = arith.mulf %317, %321 : vector<8x32xf32>
    %cst_61 = arith.constant dense<0.000000e+00> : vector<8x128xf32>
    %323 = tpu.matmul %322, %14, %cst_61 {dimension_numbers = #tpu.dot_dimension_numbers<[1], [0], [0], [1], [0, 0, 1, 1], [], []>} : vector<8x32xf32>, vector<32x128xf32>, vector<8x128xf32> -> vector<8x128xf32>
    %cst_62 = arith.constant dense<0.000000e+00> : vector<8x128xf32>
    %324 = tpu.matmul %303, %13, %cst_62 {dimension_numbers = #tpu.dot_dimension_numbers<[1], [0], [0], [1], [0, 0, 1, 1], [], []>} : vector<8x32xf32>, vector<32x128xf32>, vector<8x128xf32> -> vector<8x128xf32>
    %325 = arith.addf %323, %324 : vector<8x128xf32>
    %326 = vector.broadcast %15 : vector<1x128xf32> to vector<8x128xf32>
    %327 = arith.addf %325, %326 : vector<8x128xf32>
    %328 = vector.extract_strided_slice %327 {offsets = [0, 0], sizes = [8, 96], strides = [1, 1]} : vector<8x128xf32> to vector<8x96xf32>
    %329 = arith.negf %328 : vector<8x96xf32>
    %330 = math.exp %329 : vector<8x96xf32>
    %cst_63 = arith.constant 1.000000e+00 : f32
    %331 = vector.broadcast %cst_63 : f32 to vector<8x96xf32>
    %332 = arith.addf %331, %330 : vector<8x96xf32>
    %333 = arith.divf %331, %332 : vector<8x96xf32>
    %334 = vector.extract_strided_slice %327 {offsets = [0, 96], sizes = [8, 32], strides = [1, 1]} : vector<8x128xf32> to vector<8x32xf32>
    %335 = math.tanh %334 : vector<8x32xf32>
    %336 = vector.extract_strided_slice %333 {offsets = [0, 0], sizes = [8, 32], strides = [1, 1]} : vector<8x96xf32> to vector<8x32xf32>
    %337 = vector.extract_strided_slice %333 {offsets = [0, 32], sizes = [8, 32], strides = [1, 1]} : vector<8x96xf32> to vector<8x32xf32>
    %338 = vector.extract_strided_slice %333 {offsets = [0, 64], sizes = [8, 32], strides = [1, 1]} : vector<8x96xf32> to vector<8x32xf32>
    %339 = arith.mulf %337, %301 : vector<8x32xf32>
    %340 = arith.mulf %336, %335 : vector<8x32xf32>
    %341 = arith.addf %339, %340 : vector<8x32xf32>
    %342 = math.tanh %341 : vector<8x32xf32>
    %343 = arith.mulf %338, %342 : vector<8x32xf32>
    %c0_64 = arith.constant 0 : index
    %c0_65 = arith.constant 0 : index
    %c0_66 = arith.constant 0 : index
    %344 = vector.load %arg12[%c0_64, %c0_65, %c0_66] : memref<2x8x32xf32, #tpu.memory_space<vmem>>, vector<1x8x32xf32>
    %345 = vector.shape_cast %344 : vector<1x8x32xf32> to vector<8x32xf32>
    %346 = vector.shape_cast %322 : vector<8x32xf32> to vector<1x8x32xf32>
    tpu.vector_store %arg12[%c0_64, %c0_65, %c0_66], %346 {strides = array<i32>} : memref<2x8x32xf32, #tpu.memory_space<vmem>>, vector<1x8x32xf32>,
    %c0_67 = arith.constant 0 : index
    %c0_68 = arith.constant 0 : index
    %c0_69 = arith.constant 0 : index
    %347 = vector.load %arg13[%c0_67, %c0_68, %c0_69] : memref<2x8x32xf32, #tpu.memory_space<vmem>>, vector<1x8x32xf32>
    %348 = vector.shape_cast %347 : vector<1x8x32xf32> to vector<8x32xf32>
    %349 = vector.shape_cast %320 : vector<8x32xf32> to vector<1x8x32xf32>
    tpu.vector_store %arg13[%c0_67, %c0_68, %c0_69], %349 {strides = array<i32>} : memref<2x8x32xf32, #tpu.memory_space<vmem>>, vector<1x8x32xf32>,
    %c1_70 = arith.constant 1 : index
    %c0_71 = arith.constant 0 : index
    %c0_72 = arith.constant 0 : index
    %350 = vector.load %arg12[%c1_70, %c0_71, %c0_72] : memref<2x8x32xf32, #tpu.memory_space<vmem>>, vector<1x8x32xf32>
    %351 = vector.shape_cast %350 : vector<1x8x32xf32> to vector<8x32xf32>
    %352 = vector.shape_cast %343 : vector<8x32xf32> to vector<1x8x32xf32>
    tpu.vector_store %arg12[%c1_70, %c0_71, %c0_72], %352 {strides = array<i32>} : memref<2x8x32xf32, #tpu.memory_space<vmem>>, vector<1x8x32xf32>,
    %c1_73 = arith.constant 1 : index
    %c0_74 = arith.constant 0 : index
    %c0_75 = arith.constant 0 : index
    %353 = vector.load %arg13[%c1_73, %c0_74, %c0_75] : memref<2x8x32xf32, #tpu.memory_space<vmem>>, vector<1x8x32xf32>
    %354 = vector.shape_cast %353 : vector<1x8x32xf32> to vector<8x32xf32>
    %355 = vector.shape_cast %341 : vector<8x32xf32> to vector<1x8x32xf32>
    tpu.vector_store %arg13[%c1_73, %c0_74, %c0_75], %355 {strides = array<i32>} : memref<2x8x32xf32, #tpu.memory_space<vmem>>, vector<1x8x32xf32>,
    %c0_76 = arith.constant 0 : index
    %c0_77 = arith.constant 0 : index
    %356 = vector.load %arg9[%c0_76, %c0_77] : memref<32x128xf32, #tpu.memory_space<vmem>>, vector<32x128xf32>
    %cst_78 = arith.constant dense<0.000000e+00> : vector<8x128xf32>
    %357 = tpu.matmul %343, %356, %cst_78 {dimension_numbers = #tpu.dot_dimension_numbers<[1], [0], [0], [1], [0, 0, 1, 1], [], []>} : vector<8x32xf32>, vector<32x128xf32>, vector<8x128xf32> -> vector<8x128xf32>
    %c0_79 = arith.constant 0 : index
    %c0_80 = arith.constant 0 : index
    %358 = vector.load %arg10[%c0_79, %c0_80] : memref<1x128xf32, #tpu.memory_space<vmem>>, vector<1x128xf32>
    %359 = vector.broadcast %358 : vector<1x128xf32> to vector<8x128xf32>
    %360 = arith.addf %357, %359 : vector<8x128xf32>
    %361 = arith.negf %360 : vector<8x128xf32>
    %362 = math.exp %361 : vector<8x128xf32>
    %cst_81 = arith.constant 1.000000e+00 : f32
    %363 = vector.broadcast %cst_81 : f32 to vector<8x128xf32>
    %364 = arith.addf %363, %362 : vector<8x128xf32>
    %365 = arith.divf %363, %364 : vector<8x128xf32>
    %c0_82 = arith.constant 0 : index
    %c0_83 = arith.constant 0 : index
    %366 = vector.load %arg11[%c0_82, %c0_83] : memref<8x128xf32, #tpu.memory_space<vmem>>, vector<8x128xf32>
    tpu.vector_store %arg11[%c0_82, %c0_83], %365 {strides = array<i32>} : memref<8x128xf32, #tpu.memory_space<vmem>>, vector<8x128xf32>,
    return
  }
}

</mosaic_0001>

<bundles_post_ra>
// kernel: tpu_custom_call.1
= control target key start
LH: loop header
LB: loop body
LE: loop exit
PB: predicated region body
PF: predicated region fallthrough
CT: control target
= control target key end

     0   :  { %19 = vsyncpa [#allocation3], 0  ;;  %s2607_s0 = inlined_call_operand.vmem [shape: s32[64,1], index: 0, kind: input, shape index: {}]   ;;  %s2608_s1 = inlined_call_operand.vmem [shape: bf16[128,128], index: 1, kind: input, shape index: {}]   ;;  %s2609_s2 = inlined_call_operand.vmem [shape: f32[1,128], index: 2, kind: input, shape index: {}]   ;;  %s2610_s3 = inlined_call_operand.hbm [shape: f32[32,128], index: 3, kind: input, shape index: {}]   ;;  %s2611_s4 = inlined_call_operand.hbm [shape: f32[32,128], index: 4, kind: input, shape index: {}]   ;;  %s2612_s5 = inlined_call_operand.hbm [shape: f32[32,128], index: 5, kind: input, shape index: {}]   ;;  %s2613_s6 = inlined_call_operand.vmem [shape: f32[1,128], index: 6, kind: input, shape index: {}]   ;;  %s2614_s7 = inlined_call_operand.hbm [shape: f32[2,8,32], index: 7, kind: input, shape index: {}]   ;;  %s2615_s8 = inlined_call_operand.hbm [shape: f32[2,8,32], index: 8, kind: input, shape index: {}]   ;;  %s2616_s9 = inlined_call_operand.hbm [shape: f32[32,128], index: 9, kind: input, shape index: {}]   ;;  %s2617_s10 = inlined_call_operand.vmem [shape: f32[1,128], index: 10, kind: input, shape index: {}]   ;;  %s2618_s11 = inlined_call_operand.hbm [shape: f32[8,128], index: 11, kind: output, shape index: {0}]   ;;  %s2619_s12 = inlined_call_operand.hbm [shape: f32[2,8,32], index: 12, kind: output, shape index: {1}]   ;;  %s2620_s13 = inlined_call_operand.hbm [shape: f32[2,8,32], index: 13, kind: output, shape index: {2}]  }
   0x1   :  { %20 = vsyncpa [#allocation6], 0 }
   0x2   :  { %21 = vsyncpa [#allocation9], 0 }
   0x3   :  { %22 = vsyncpa [#allocation12], 0 }
   0x4   :  { %23 = vsyncpa [#allocation4], 0 }
   0x5   :  { %24 = vsyncpa [#allocation15], 0  ;;  %s48_s27 = sshll.u32 %s2611_s4, 4  ;;  %s2110_s28 = smov [#allocation5]   ;;  %s49_s27 = int_to_ptr.hbm [resolvable:$true] %s48_s27 }
   0x6   :  { %s50_s29 = sshll.u32 %s2110_s28, 4  ;;  %s76_s15 = sshll.u32 %s2614_s7, 4  ;;  %s51_s29 = int_to_ptr.vmem [resolvable:$true] %s50_s29  ;;  %s77_s15 = int_to_ptr.hbm [resolvable:$true] %s76_s15 }
   0x7   :  { %s2111_s16 = smov 128   ;;  %s2112_s17 = smov 8  }
   0x8   :  { %56 = dma.hbm_to_vmem [thread:$0]  %s49_s27, 512, %s51_s29, [#allocation6], %s2111_s16, %s2111_s16, %s2112_s17  }
   0x9   :  { %s2113_s18 = smov [#allocation8]   ;;  %s35_s4 = sshll.u32 %s2610_s3, 4  ;;  %s36_s4 = int_to_ptr.hbm [resolvable:$true] %s35_s4 }
   0xa   :  { %s78_s19 = sshll.u32 %s2113_s18, 4  ;;  %s61_s23 = sshll.u32 %s2612_s5, 4  ;;  %s79_s19 = int_to_ptr.vmem [resolvable:$true] %s78_s19  ;;  %s62_s23 = int_to_ptr.hbm [resolvable:$true] %s61_s23 }
   0xb   :  { %84 = dma.hbm_to_vmem [thread:$0]  %s77_s15, 256, %s79_s19, [#allocation9], %s2111_s16, %s2111_s16, %s2112_s17  }
   0xc   :  { %s2114_s24 = smov [#allocation2]   ;;  %s2115_s26 = smov [#allocation7]  }
   0xd   :  { %s37_s25 = sshll.u32 %s2114_s24, 4  ;;  %s63_s3 = sshll.u32 %s2115_s26, 4  ;;  %s38_s25 = int_to_ptr.vmem [resolvable:$true] %s37_s25  ;;  %s64_s3 = int_to_ptr.vmem [resolvable:$true] %s63_s3 }
   0xe   :  { %43 = dma.hbm_to_vmem [thread:$0]  %s36_s4, 512, %s38_s25, [#allocation3], %s2111_s16, %s2111_s16, %s2112_s17  }
   0xf   :  { %s89_s29 = sshll.u32 %s2615_s8, 4  ;;  %s102_s14 = sshll.u32 %s2616_s9, 4  ;;  %s90_s29 = int_to_ptr.hbm [resolvable:$true] %s89_s29  ;;  %s103_s14 = int_to_ptr.hbm [resolvable:$true] %s102_s14 }
  0x10   :  { %69 = dma.hbm_to_vmem [thread:$0]  %s62_s23, 512, %s64_s3, [#allocation6], %s2111_s16, %s2111_s16, %s2112_s17  }
  0x11   :  { %s2116_s15 = smov [#allocation10]   ;;  %s2117_s19 = smov [#allocation11]  }
  0x12   :  { %s91_s18 = sshll.u32 %s2116_s15, 4  ;;  %s104_s8 = sshll.u32 %s2117_s19, 4  ;;  %s92_s18 = int_to_ptr.vmem [resolvable:$true] %s91_s18  ;;  %s105_s8 = int_to_ptr.vmem [resolvable:$true] %s104_s8 }
  0x13   :  { %97 = dma.hbm_to_vmem [thread:$0]  %s90_s29, 256, %s92_s18, [#allocation9], %s2111_s16, %s2111_s16, %s2112_s17  }
  0x14   :  { %110 = dma.hbm_to_vmem [thread:$0]  %s103_s14, 512, %s105_s8, [#allocation12], %s2111_s16, %s2111_s16, %s2112_s17  }
  0x15   :  { %2098 = dma.done.wait [#allocation3], 512  }
  0x16   :  { %2099 = vsyncadd [#allocation3], 4294966784 }
  0x17   :  { %2100 = dma.done.wait [#allocation6], 1024  }
  0x18   :  { %2101 = vsyncadd [#allocation6], 4294966272 }
  0x19   :  { %2102 = dma.done.wait [#allocation9], 512  }
  0x1a   :  { %2103 = vsyncadd [#allocation9], 4294966784 }
  0x1b   :  { %2104 = dma.done.wait [#allocation12], 512  }
  0x1c   :  { %2105 = vsyncadd [#allocation12], 4294966784  ;;  %v2118_v0 = vmov 0   ;;  %v137_v1 = vld [vmem:[%s2607_s0] sm:$0xff]  ;;  %v1717_v2 = vld [vmem:[%s2608_s1 + $0x38] sm:$0xff]  ;;  %vm315_vm0 = vcmask 261120   ;;  %v145_v17 = vlaneseq }
  0x1d   :  { %1734 = vset.pattern.permute.xlu0 %v2118_v0  ;;  %1735 = vset.pattern.permute.xlu1 %v2118_v0  ;;  %v1716_v3 = vld [vmem:[%s2608_s1 + $0x30] sm:$0xff]  ;;  %v138_v4 = vld [vmem:[%s2607_s0 + $0x8] sm:$0xff]  ;;  %v1714_v6 = vld [vmem:[%s2608_s1 + $0x20] sm:$0xff]  ;;  %v2119_v20 = vmov 1.0|1.0   ;;  %s2120_s9 = smov 32  }
  0x1e   :  { %1736 = vset.pattern.permute.xlu2 %v2118_v0  ;;  %148 = vperm.xlu0 %1734, %v137_v1   ;;  %v1715_v5 = vld [vmem:[%s2608_s1 + $0x28] sm:$0xff]  ;;  %v1713_v7 = vld [vmem:[%s2608_s1 + $0x18] sm:$0xff]  ;;  %v1712_v8 = vld [vmem:[%s2608_s1 + $0x10] sm:$0xff]  ;;  %v2283_v18 = vand.u32 127, %v145_v17  ;;  %s2121_s20 = smov 64   ;;  %s2123_s8 = smov [#allocation14]  }
  0x1f   :  { %267 = vmatpush.bf16.msra.mxu0 %v1717_v2  ;;  %v1711_v9 = vld [vmem:[%s2608_s1 + $0x8] sm:$0xff]  ;;  %v2259_v10 = vld [vmem:[#allocation2 + $0x18] sm:$0xff]  ;;  %v2262_v11 = vld [vmem:[#allocation2 + $0x10] sm:$0xff]  ;;  %s1595_s22 = sshll.u32 %s2620_s13, 4  ;;  %s2125_s13 = smov [#allocation13]   ;;  %s1596_s22 = int_to_ptr.hbm [resolvable:$true] %s1595_s22 }
  0x20   :  { %331 = vmatpush.msra.mxu1 %v2259_v10  ;;  %v1710_v12 = vld [vmem:[%s2608_s1] sm:$0xff]  ;;  %v2268_v13 = vld [vmem:[#allocation2 + $0x8] sm:$0xff]  ;;  %v312_v27 = vld [vmem:[#allocation10] sm:$0xff]  ;;  %s1582_s1 = sshll.u32 %s2619_s12, 4  ;;  %s1583_s1 = int_to_ptr.hbm [resolvable:$true] %s1582_s1 }
  0x21   :  { %v2271_v14 = vld [vmem:[#allocation2] sm:$0xff]  ;;  %v2301_v48 = vld [vmem:[#allocation7 + $0x18] sm:$0xff]  ;;  %v2305_v50 = vld [vmem:[#allocation7 + $0x10] sm:$0xff] }
  0x22   :  { %332 = vmatpush.msra.mxu1 %v2262_v11  ;;  %v309_v15 = vld [vmem:[#allocation8] sm:$0xff]  ;;  %v2303_v49 = vld [vmem:[#allocation5 + $0x18] sm:$0xff]  ;;  %396 = vmatpush.msra.mxu2 %v2301_v48  ;;  %v2309_v51 = vld [vmem:[#allocation5 + $0x10] sm:$0xff] }
  0x23   :  { %268 = vmatpush.bf16.msra.mxu0 %v1716_v3  ;;  %v2291_v21 = vld [vmem:[%s2609_s2] ss:$0 sm:$0xff]  ;;  %421 = vmatpush.msra.mxu3 %v2303_v49  ;;  %v2311_v52 = vld [vmem:[#allocation7 + $0x8] sm:$0xff]  ;;  %v314_v59 = vld [vmem:[#allocation10 + $0x8] sm:$0xff] }
  0x24   :  { %333 = vmatpush.msra.mxu1 %v2268_v13  ;;  %v2313_v53 = vld [vmem:[#allocation5 + $0x8] sm:$0xff]  ;;  %397 = vmatpush.msra.mxu2 %v2305_v50  ;;  %v2317_v54 = vld [vmem:[#allocation7] sm:$0xff] }
  0x25   :  { %422 = vmatpush.msra.mxu3 %v2309_v51  ;;  %v2319_v55 = vld [vmem:[#allocation5] sm:$0xff]  ;;  %v311_v58 = vld [vmem:[#allocation8 + $0x8] sm:$0xff] }
  0x26   :  { %151 = vperm.xlu0 %1734, %v138_v4   ;;  %334 = vmatpush.msra.mxu1 %v2271_v14  ;;  %v2354_v2 = vld [vmem:[%s2613_s6] ss:$0 sm:$0xff] }
  0x27   :  { %269 = vmatpush.bf16.msra.mxu0 %v1715_v5  ;;  %1668 = vmatmul.msk.f32.vlgmr.msra.gmra.mxu1 %vm315_vm0, %v309_v15 }
  0x28   :  { %486 = vmatpush.msrb.mxu1 %v2259_v10  ;;  %398 = vmatpush.msra.mxu2 %v2311_v52 }
  0x29   :  { %423 = vmatpush.msra.mxu3 %v2313_v53 }
  0x2a   :  { %487 = vmatpush.msrb.mxu1 %v2262_v11  ;;  %399 = vmatpush.msra.mxu2 %v2317_v54 }
  0x2b   :  { %270 = vmatpush.bf16.msra.mxu0 %v1714_v6  ;;  %424 = vmatpush.msra.mxu3 %v2319_v55 }
  0x2c   :  { %488 = vmatpush.msrb.mxu1 %v2268_v13  ;;  %549 = vmatpush.msrb.mxu2 %v2301_v48 }
  0x2d   :  { %574 = vmatpush.msrb.mxu3 %v2303_v49  ;;  %1670 = vmatmul.msk.f32.vlgmr.msra.gmra.mxu2 %vm315_vm0, %v311_v58 }
  0x2e   :  { %489 = vmatpush.msrb.mxu1 %v2271_v14  ;;  %550 = vmatpush.msrb.mxu2 %v2305_v50 }
  0x2f   :  { %271 = vmatpush.bf16.msra.mxu0 %v1713_v7  ;;  %575 = vmatpush.msrb.mxu3 %v2309_v51 }
  0x30   :  { %632 = vmatpush.msra.mxu1 %v2259_v10  ;;  %551 = vmatpush.msrb.mxu2 %v2311_v52 }
  0x31   :  { %576 = vmatpush.msrb.mxu3 %v2313_v53 }
  0x32   :  { %633 = vmatpush.msra.mxu1 %v2262_v11  ;;  %552 = vmatpush.msrb.mxu2 %v2317_v54 }
  0x33   :  { %272 = vmatpush.bf16.msra.mxu0 %v1712_v8  ;;  %577 = vmatpush.msrb.mxu3 %v2319_v55 }
  0x34   :  { %634 = vmatpush.msra.mxu1 %v2268_v13  ;;  %695 = vmatpush.msra.mxu2 %v2301_v48 }
  0x36   :  { %635 = vmatpush.msra.mxu1 %v2271_v14  ;;  %696 = vmatpush.msra.mxu2 %v2305_v50 }
  0x37   :  { %273 = vmatpush.bf16.msra.mxu0 %v1711_v9 }
  0x38   :  { %697 = vmatpush.msra.mxu2 %v2311_v52 }
  0x3a   :  { %698 = vmatpush.msra.mxu2 %v2317_v54 }
  0x3b   :  { %274 = vmatpush.bf16.msra.mxu0 %v1710_v12 }
  0x90   :  { %v149_v16 = vpop.permute.xlu0 %148 }
  0x91   :  { %vm171_vm1 = vcmp.eq.s32.totalorder %v2283_v18, %v149_v16 }
  0x98   :  { %v152_v19 = vpop.permute.xlu0 %151 }
  0x99   :  { %vm172_vm2 = vcmp.eq.s32.totalorder %v2283_v18, %v152_v19 }
  0x9a   :  { %vm1660_vm3 = vmpackc.low %vm172_vm2, %vm171_vm1 }
  0x9b   :  { %1661 = vmatmul.msk.bf16.vlgmr.msra.gmra.mxu0 %vm1660_vm3, %v2119_v20 }
  0xa4   :  { %v336_v23 = vpop.f32.mrf.mxu1 }
  0xb0   :  { %v401_v1 = vpop.f32.mrf.mxu2 }
 0x118   :  { %v276_v22 = vpop.f32.mrf.mxu0 }
 0x119   :  { %v277_v24 = vadd.f32 %v2291_v21, %v276_v22 }
 0x11b   :  { %v339_v25 = vadd.f32 %v336_v23, %v277_v24 }
 0x11d   :  { %1740 = vtanh.f32 %v339_v25  ;;  %v1669_v28 = vmul.f32 -1.442695, %v339_v25 }
 0x11f   :  { %1742 = vpow2.f32 %v1669_v28 }
 0x120   :  { %v278_v61 = vpop.f32.mrf.mxu0 }
 0x121   :  { %v279_v62 = vadd.f32 %v2291_v21, %v278_v61 }
 0x123   :  { %v1741_v26 = vpop.eup %1740 }
 0x124   :  { %366 = vrot.lane.b32.xlu1 %v1741_v26, %s2120_s9 }
 0x125   :  { %v1743_v29 = vpop.eup %1742 }
 0x126   :  { %v343_v30 = vadd.f32 1.0, %v1743_v29 }
 0x128   :  { %1744 = vrcp.f32 %v343_v30  ;;  %v355_v36 = vand.u32 2147483648, %v343_v30  ;;  %vm349_vm5 = vweird.f32 %v343_v30  ;;  %v353_v37 = vand.u32 2147483647, %v343_v30 }
 0x12a   :  { %v356_v39 = vor.u32 1.1754944e-38, %v355_v36  ;;  %vm354_vm7 = vcmp.eq.f32.partialorder %v353_v37, 8.507059e+37 }
 0x12c   :  { %361 = vrot.lane.b32.xlu1 %v312_v27, %s2120_s9 }
 0x12e   :  { %v1745_v31 = vpop.eup %1744 }
 0x12f   :  { %v345_v32 = vmul.f32 %v1745_v31, %v343_v30  ;;  %vm350_vm4 = vweird.f32 %v1745_v31 }
 0x130   :  { %vm351_vm6 = vmor %vm349_vm5, %vm350_vm4 }
 0x131   :  { %v346_v33 = vsub.f32 1.0, %v345_v32 }
 0x133   :  { %v347_v34 = vmul.f32 %v1745_v31, %v346_v33 }
 0x135   :  { %v348_v35 = vadd.f32 %v1745_v31, %v347_v34 }
 0x137   :  { %v352_v38 = vsel %vm351_vm6, %v1745_v31, %v348_v35 }
 0x138   :  { %v357_v41 = vsel %vm354_vm7, %v356_v39, %v352_v38 }
 0x196   :  { %v367_v40 = vpop.permute.xlu1 %366 }
 0x197   :  { %v369_v42 = vmul.f32 %v367_v40, %v357_v41 }
 0x199   :  { %371 = vrot.lane.b32.xlu2 %v369_v42, %s2120_s9 }
 0x19e   :  { %v362_v43 = vpop.permute.xlu1 %361 }
 0x19f   :  { %v364_v44 = vmul.f32 %v362_v43, %v357_v41 }
 0x1f3   :  { %v372_v45 = vpop.permute.xlu2 %371 }
 0x1f4   :  { %v2297_v46 = vadd.f32 %v372_v45, %v364_v44 }
 0x1f6   :  { %1746 = vtanh.f32 %v2297_v46 }
 0x1fc   :  { %v1747_v47 = vpop.eup %1746 }
 0x1fd   :  { %377 = vrot.lane.b32.xlu2 %v1747_v47, %s2120_s9 }
 0x257   :  { %v378_v56 = vpop.permute.xlu2 %377 }
 0x258   :  { %v380_v57 = vmul.f32 %v378_v56, %v357_v41 }
 0x25a   :  { %405 = vrot.lane.b32.xlu0 %v380_v57, %s2121_s20 }
 0x262   :  { %454 = vrot.lane.b32.xlu0 %v314_v59, %s2120_s9 }
 0x2cc   :  { %v406_v60 = vpop.permute.xlu0 %405 }
 0x2cd   :  { %1671 = vmatmul.msk.f32.vlgmr.msra.gmra.mxu3 %vm315_vm0, %v406_v60  ;;  %1673 = vmatmul.msk.f32.vlgmr.msrb.gmra.mxu1 %vm315_vm0, %v406_v60 }
 0x2ce   :  { %778 = vmatpush.msrb.mxu1 %v2259_v10  ;;  %720 = vmatpush.msra.mxu3 %v2303_v49 }
 0x2d0   :  { %779 = vmatpush.msrb.mxu1 %v2262_v11  ;;  %721 = vmatpush.msra.mxu3 %v2309_v51 }
 0x2d2   :  { %780 = vmatpush.msrb.mxu1 %v2268_v13  ;;  %722 = vmatpush.msra.mxu3 %v2313_v53 }
 0x2d4   :  { %781 = vmatpush.msrb.mxu1 %v2271_v14  ;;  %723 = vmatpush.msra.mxu3 %v2319_v55  ;;  %v455_v58 = vpop.permute.xlu0 %454 }
 0x34a   :  { %v491_v63 = vpop.f32.mrf.mxu1 }
 0x34b   :  { %v494_v0 = vadd.f32 %v491_v63, %v279_v62 }
 0x34d   :  { %1748 = vtanh.f32 %v494_v0  ;;  %v1674_v8 = vmul.f32 -1.442695, %v494_v0 }
 0x350   :  { %v426_v3 = vpop.f32.mrf.mxu3 }
 0x351   :  { %v427_v4 = vadd.f32 %v426_v3, %v401_v1 }
 0x353   :  { %v1749_v5 = vpop.eup %1748  ;;  %v432_v6 = vadd.f32 %v2354_v2, %v427_v4  ;;  %v140_v4 = vld [vmem:[%s2607_s0 + $0x18] sm:$0xff] }
 0x354   :  { %517 = vrot.lane.b32.xlu2 %v1749_v5, %s2120_s9 }
 0x355   :  { %1750 = vtanh.f32 %v432_v6  ;;  %v1672_v19 = vmul.f32 -1.442695, %v432_v6 }
 0x356   :  { %1752 = vpow2.f32 %v1674_v8 }
 0x35b   :  { %v1751_v7 = vpop.eup %1750 }
 0x35c   :  { %459 = vrot.lane.b32.xlu1 %v1751_v7, %s2120_s9  ;;  %v1753_v9 = vpop.eup %1752 }
 0x35d   :  { %v498_v12 = vadd.f32 1.0, %v1753_v9 }
 0x35f   :  { %1754 = vrcp.f32 %v498_v12  ;;  %v510_v24 = vand.u32 2147483648, %v498_v12  ;;  %vm504_vm9 = vweird.f32 %v498_v12  ;;  %v508_v25 = vand.u32 2147483647, %v498_v12 }
 0x360   :  { %1756 = vpow2.f32 %v1672_v19 }
 0x361   :  { %v511_v28 = vor.u32 1.1754944e-38, %v510_v24  ;;  %vm509_vm11 = vcmp.eq.f32.partialorder %v508_v25, 8.507059e+37 }
 0x365   :  { %v1755_v15 = vpop.eup %1754 }
 0x366   :  { %v500_v16 = vmul.f32 %v1755_v15, %v498_v12  ;;  %vm505_vm8 = vweird.f32 %v1755_v15  ;;  %v1757_v26 = vpop.eup %1756 }
 0x367   :  { %vm506_vm10 = vmor %vm504_vm9, %vm505_vm8  ;;  %v436_v29 = vadd.f32 1.0, %v1757_v26 }
 0x368   :  { %v501_v17 = vsub.f32 1.0, %v500_v16 }
 0x369   :  { %1758 = vrcp.f32 %v436_v29  ;;  %v448_v38 = vand.u32 2147483648, %v436_v29  ;;  %vm442_vm13 = vweird.f32 %v436_v29  ;;  %v446_v39 = vand.u32 2147483647, %v436_v29 }
 0x36a   :  { %v502_v22 = vmul.f32 %v1755_v15, %v501_v17 }
 0x36b   :  { %v449_v41 = vor.u32 1.1754944e-38, %v448_v38  ;;  %vm447_vm15 = vcmp.eq.f32.partialorder %v446_v39, 8.507059e+37 }
 0x36c   :  { %v503_v23 = vadd.f32 %v1755_v15, %v502_v22 }
 0x36e   :  { %v507_v27 = vsel %vm506_vm10, %v1755_v15, %v503_v23 }
 0x36f   :  { %v512_v31 = vsel %vm509_vm11, %v511_v28, %v507_v27  ;;  %v1759_v33 = vpop.eup %1758 }
 0x370   :  { %v438_v34 = vmul.f32 %v1759_v33, %v436_v29  ;;  %vm443_vm12 = vweird.f32 %v1759_v33  ;;  %v515_v45 = vmul.f32 %v512_v31, %v2297_v46  ;;  %v139_v46 = vld [vmem:[%s2607_s0 + $0x10] sm:$0xff] }
 0x371   :  { %vm444_vm14 = vmor %vm442_vm13, %vm443_vm12 }
 0x372   :  { %v439_v35 = vsub.f32 1.0, %v438_v34 }
 0x374   :  { %v440_v36 = vmul.f32 %v1759_v33, %v439_v35 }
 0x376   :  { %v441_v37 = vadd.f32 %v1759_v33, %v440_v36 }
 0x378   :  { %v445_v40 = vsel %vm444_vm14, %v1759_v33, %v441_v37 }
 0x379   :  { %v450_v42 = vsel %vm447_vm15, %v449_v41, %v445_v40 }
 0x37a   :  { %v457_v59 = vmul.f32 %v455_v58, %v450_v42 }
 0x3ae   :  { %v518_v30 = vpop.permute.xlu2 %517 }
 0x3af   :  { %v520_v32 = vmul.f32 %v518_v30, %v512_v31 }
 0x3b1   :  { %522 = vrot.lane.b32.xlu2 %v520_v32, %s2120_s9 }
 0x3ce   :  { %v460_v43 = vpop.permute.xlu1 %459 }
 0x3cf   :  { %v462_v44 = vmul.f32 %v460_v43, %v450_v42 }
 0x3d1   :  { %464 = vrot.lane.b32.xlu1 %v462_v44, %s2120_s9 }
 0x40b   :  { %v523_v47 = vpop.permute.xlu2 %522 }
 0x40c   :  { %v2362_v56 = vadd.f32 %v523_v47, %v515_v45 }
 0x40e   :  { %1760 = vtanh.f32 %v2362_v56 }
 0x414   :  { %v1761_v57 = vpop.eup %1760 }
 0x415   :  { %528 = vrot.lane.b32.xlu1 %v1761_v57, %s2120_s9 }
 0x41d   :  { %154 = vperm.xlu1 %1735, %v139_v46  }
 0x443   :  { %v465_v60 = vpop.permute.xlu1 %464 }
 0x444   :  { %v2366_v61 = vadd.f32 %v465_v60, %v457_v59 }
 0x446   :  { %1762 = vtanh.f32 %v2366_v61 }
 0x44c   :  { %v1763_v62 = vpop.eup %1762 }
 0x44d   :  { %470 = vrot.lane.b32.xlu0 %v1763_v62, %s2120_s9 }
 0x487   :  { %v529_v63 = vpop.permute.xlu1 %528 }
 0x488   :  { %v531_v0 = vmul.f32 %v529_v63, %v512_v31 }
 0x48a   :  { %558 = vrot.lane.b32.xlu0 %v531_v0, %s2121_s20 }
 0x48f   :  { %v155_v7 = vpop.permute.xlu1 %154 }
 0x490   :  { %vm173_vm1 = vcmp.eq.s32.totalorder %v2283_v18, %v155_v7 }
 0x4bf   :  { %v471_v1 = vpop.permute.xlu0 %470 }
 0x4c0   :  { %v473_v3 = vmul.f32 %v471_v1, %v450_v42 }
 0x4c2   :  { %533 = vrot.lane.b32.xlu2 %v473_v3, %s2121_s20 }
 0x4ca   :  { %157 = vperm.xlu2 %1736, %v140_v4  }
 0x4fc   :  { %v559_v5 = vpop.permute.xlu0 %558 }
 0x4fd   :  { %1676 = vmatmul.msk.f32.vlgmr.msrb.gmra.mxu3 %vm315_vm0, %v559_v5  ;;  %1678 = vmatmul.msk.f32.vlgmr.msra.gmra.mxu1 %vm315_vm0, %v559_v5 }
 0x4fe   :  { %866 = vmatpush.msrb.mxu3 %v2303_v49  ;;  %924 = vmatpush.msra.mxu1 %v2259_v10 }
 0x500   :  { %867 = vmatpush.msrb.mxu3 %v2309_v51  ;;  %925 = vmatpush.msra.mxu1 %v2262_v11 }
 0x502   :  { %868 = vmatpush.msrb.mxu3 %v2313_v53  ;;  %926 = vmatpush.msra.mxu1 %v2268_v13 }
 0x504   :  { %869 = vmatpush.msrb.mxu3 %v2319_v55  ;;  %927 = vmatpush.msra.mxu1 %v2271_v14 }
 0x51c   :  { %v534_v6 = vpop.permute.xlu2 %533 }
 0x51d   :  { %1675 = vmatmul.msk.f32.vlgmr.msrb.gmra.mxu2 %vm315_vm0, %v534_v6 }
 0x51e   :  { %841 = vmatpush.msrb.mxu2 %v2301_v48 }
 0x520   :  { %842 = vmatpush.msrb.mxu2 %v2305_v50 }
 0x522   :  { %843 = vmatpush.msrb.mxu2 %v2311_v52 }
 0x524   :  { %v158_v8 = vpop.permute.xlu2 %157  ;;  %844 = vmatpush.msrb.mxu2 %v2317_v54 }
 0x525   :  { %vm174_vm2 = vcmp.eq.s32.totalorder %v2283_v18, %v158_v8 }
 0x526   :  { %vm1662_vm3 = vmpackc.low %vm174_vm2, %vm173_vm1 }
 0x527   :  { %1663 = vmatmul.msk.bf16.gmra.mxu0 %vm1662_vm3, %v2119_v20 }
 0x57a   :  { %v637_v22 = vpop.f32.mrf.mxu1 }
 0x580   :  { %v579_v9 = vpop.f32.mrf.mxu3 }
 0x5a0   :  { %v554_v12 = vpop.f32.mrf.mxu2 }
 0x5a1   :  { %v580_v15 = vadd.f32 %v579_v9, %v554_v12 }
 0x5a3   :  { %v582_v16 = vadd.f32 %v2354_v2, %v580_v15 }
 0x5a4   :  { %v281_v17 = vpop.f32.mrf.mxu0 }
 0x5a5   :  { %1764 = vtanh.f32 %v582_v16  ;;  %v282_v19 = vadd.f32 %v2291_v21, %v281_v17  ;;  %v1677_v26 = vmul.f32 -1.442695, %v582_v16 }
 0x5a7   :  { %v640_v23 = vadd.f32 %v637_v22, %v282_v19 }
 0x5a9   :  { %1766 = vtanh.f32 %v640_v23  ;;  %v1679_v27 = vmul.f32 -1.442695, %v640_v23 }
 0x5aa   :  { %1768 = vpow2.f32 %v1677_v26 }
 0x5ab   :  { %v1765_v24 = vpop.eup %1764  ;;  %1770 = vpow2.f32 %v1679_v27 }
 0x5ac   :  { %605 = vrot.lane.b32.xlu0 %v1765_v24, %s2120_s9  ;;  %v283_v22 = vpop.f32.mrf.mxu0 }
 0x5ad   :  { %v284_v23 = vadd.f32 %v2291_v21, %v283_v22 }
 0x5af   :  { %v1767_v25 = vpop.eup %1766 }
 0x5b0   :  { %663 = vrot.lane.b32.xlu1 %v1767_v25, %s2120_s9  ;;  %v1769_v28 = vpop.eup %1768 }
 0x5b1   :  { %v586_v29 = vadd.f32 1.0, %v1769_v28  ;;  %v1771_v30 = vpop.eup %1770 }
 0x5b2   :  { %v644_v31 = vadd.f32 1.0, %v1771_v30 }
 0x5b3   :  { %1772 = vrcp.f32 %v586_v29  ;;  %v598_v41 = vand.u32 2147483648, %v586_v29  ;;  %vm592_vm5 = vweird.f32 %v586_v29  ;;  %v596_v42 = vand.u32 2147483647, %v586_v29 }
 0x5b4   :  { %1774 = vrcp.f32 %v644_v31  ;;  %v656_v47 = vand.u32 2147483648, %v644_v31  ;;  %vm650_vm9 = vweird.f32 %v644_v31  ;;  %v654_v57 = vand.u32 2147483647, %v644_v31 }
 0x5b5   :  { %v599_v45 = vor.u32 1.1754944e-38, %v598_v41  ;;  %vm597_vm8 = vcmp.eq.f32.partialorder %v596_v42, 8.507059e+37 }
 0x5b6   :  { %v657_v46 = vor.u32 1.1754944e-38, %v656_v47  ;;  %vm655_vm11 = vcmp.eq.f32.partialorder %v654_v57, 8.507059e+37 }
 0x5b9   :  { %v1773_v32 = vpop.eup %1772 }
 0x5ba   :  { %v588_v33 = vmul.f32 %v1773_v32, %v586_v29  ;;  %v1775_v34 = vpop.eup %1774  ;;  %vm593_vm4 = vweird.f32 %v1773_v32 }
 0x5bb   :  { %v646_v36 = vmul.f32 %v1775_v34, %v644_v31  ;;  %vm594_vm6 = vmor %vm592_vm5, %vm593_vm4  ;;  %vm651_vm7 = vweird.f32 %v1775_v34 }
 0x5bc   :  { %v589_v35 = vsub.f32 1.0, %v588_v33  ;;  %vm652_vm10 = vmor %vm650_vm9, %vm651_vm7 }
 0x5bd   :  { %v647_v38 = vsub.f32 1.0, %v646_v36 }
 0x5be   :  { %v590_v37 = vmul.f32 %v1773_v32, %v589_v35 }
 0x5bf   :  { %v648_v40 = vmul.f32 %v1775_v34, %v647_v38 }
 0x5c0   :  { %v591_v39 = vadd.f32 %v1773_v32, %v590_v37 }
 0x5c1   :  { %v649_v44 = vadd.f32 %v1775_v34, %v648_v40 }
 0x5c2   :  { %v595_v43 = vsel %vm594_vm6, %v1773_v32, %v591_v39 }
 0x5c3   :  { %v600_v59 = vsel %vm597_vm8, %v599_v45, %v595_v43  ;;  %v653_v62 = vsel %vm652_vm10, %v1775_v34, %v649_v44 }
 0x5c4   :  { %v658_v0 = vsel %vm655_vm11, %v657_v46, %v653_v62  ;;  %v603_v3 = vmul.f32 %v600_v59, %v2366_v61 }
 0x5c5   :  { %v661_v7 = vmul.f32 %v658_v0, %v2362_v56 }
 0x61e   :  { %v606_v58 = vpop.permute.xlu0 %605 }
 0x61f   :  { %v608_v60 = vmul.f32 %v606_v58, %v600_v59 }
 0x621   :  { %610 = vrot.lane.b32.xlu2 %v608_v60, %s2120_s9 }
 0x622   :  { %v664_v63 = vpop.permute.xlu1 %663 }
 0x623   :  { %v666_v1 = vmul.f32 %v664_v63, %v658_v0 }
 0x625   :  { %668 = vrot.lane.b32.xlu0 %v666_v1, %s2120_s9 }
 0x67b   :  { %v611_v4 = vpop.permute.xlu2 %610 }
 0x67c   :  { %v2403_v5 = vadd.f32 %v611_v4, %v603_v3 }
 0x67e   :  { %1776 = vtanh.f32 %v2403_v5 }
 0x684   :  { %v1777_v6 = vpop.eup %1776 }
 0x685   :  { %616 = vrot.lane.b32.xlu1 %v1777_v6, %s2120_s9 }
 0x697   :  { %v669_v8 = vpop.permute.xlu0 %668 }
 0x698   :  { %v2408_v9 = vadd.f32 %v669_v8, %v661_v7 }
 0x69a   :  { %1778 = vtanh.f32 %v2408_v9 }
 0x6a0   :  { %v1779_v12 = vpop.eup %1778 }
 0x6a1   :  { %674 = vrot.lane.b32.xlu2 %v1779_v12, %s2120_s9 }
 0x6f7   :  { %v617_v15 = vpop.permute.xlu1 %616 }
 0x6f8   :  { %v619_v61 = vmul.f32 %v617_v15, %v600_v59 }
 0x6fa   :  { %679 = vrot.lane.b32.xlu0 %v619_v61, %s2121_s20 }
 0x6fb   :  { %v675_v16 = vpop.permute.xlu2 %674 }
 0x6fc   :  { %v677_v17 = vmul.f32 %v675_v16, %v658_v0 }
 0x6fe   :  { %704 = vrot.lane.b32.xlu1 %v677_v17, %s2121_s20 }
 0x76c   :  { %v680_v19 = vpop.permute.xlu0 %679 }
 0x76d   :  { %1680 = vmatmul.msk.f32.vlgmr.msra.gmra.mxu2 %vm315_vm0, %v680_v19 }
 0x76e   :  { %987 = vmatpush.msra.mxu2 %v2301_v48 }
 0x770   :  { %v705_v56 = vpop.permute.xlu1 %704  ;;  %988 = vmatpush.msra.mxu2 %v2305_v50 }
 0x771   :  { %1681 = vmatmul.msk.f32.vlgmr.msra.gmra.mxu3 %vm315_vm0, %v705_v56  ;;  %1683 = vmatmul.msk.f32.vlgmr.msrb.gmra.mxu1 %vm315_vm0, %v705_v56 }
 0x772   :  { %1012 = vmatpush.msra.mxu3 %v2303_v49  ;;  %1070 = vmatpush.msrb.mxu1 %v2259_v10 }
 0x773   :  { %989 = vmatpush.msra.mxu2 %v2311_v52 }
 0x774   :  { %1013 = vmatpush.msra.mxu3 %v2309_v51  ;;  %1071 = vmatpush.msrb.mxu1 %v2262_v11 }
 0x775   :  { %990 = vmatpush.msra.mxu2 %v2317_v54 }
 0x776   :  { %1014 = vmatpush.msra.mxu3 %v2313_v53  ;;  %1072 = vmatpush.msrb.mxu1 %v2268_v13 }
 0x778   :  { %1015 = vmatpush.msra.mxu3 %v2319_v55  ;;  %1073 = vmatpush.msrb.mxu1 %v2271_v14 }
 0x7ee   :  { %v783_v24 = vpop.f32.mrf.mxu1 }
 0x7ef   :  { %v786_v25 = vadd.f32 %v783_v24, %v284_v23  ;;  %v141_v23 = vld [vmem:[%s2607_s0 + $0x20] sm:$0xff] }
 0x7f0   :  { %v700_v26 = vpop.f32.mrf.mxu2 }
 0x7f1   :  { %1780 = vtanh.f32 %v786_v25  ;;  %v1684_v35 = vmul.f32 -1.442695, %v786_v25 }
 0x7f4   :  { %v725_v27 = vpop.f32.mrf.mxu3 }
 0x7f5   :  { %v726_v28 = vadd.f32 %v725_v27, %v700_v26  ;;  %v142_v27 = vld [vmem:[%s2607_s0 + $0x28] sm:$0xff] }
 0x7f7   :  { %v1781_v29 = vpop.eup %1780  ;;  %v728_v30 = vadd.f32 %v2354_v2, %v726_v28 }
 0x7f8   :  { %809 = vrot.lane.b32.xlu0 %v1781_v29, %s2120_s9 }
 0x7f9   :  { %1782 = vtanh.f32 %v728_v30  ;;  %v1682_v32 = vmul.f32 -1.442695, %v728_v30 }
 0x7fb   :  { %1784 = vpow2.f32 %v1682_v32 }
 0x7ff   :  { %v1783_v31 = vpop.eup %1782 }
 0x800   :  { %751 = vrot.lane.b32.xlu2 %v1783_v31, %s2120_s9 }
 0x801   :  { %v1785_v33 = vpop.eup %1784 }
 0x802   :  { %v732_v34 = vadd.f32 1.0, %v1785_v33 }
 0x804   :  { %1786 = vrcp.f32 %v732_v34  ;;  %v744_v44 = vand.u32 2147483648, %v732_v34  ;;  %vm738_vm13 = vweird.f32 %v732_v34  ;;  %v742_v45 = vand.u32 2147483647, %v732_v34 }
 0x805   :  { %1788 = vpow2.f32 %v1684_v35 }
 0x806   :  { %v745_v58 = vor.u32 1.1754944e-38, %v744_v44  ;;  %vm743_vm15 = vcmp.eq.f32.partialorder %v742_v45, 8.507059e+37 }
 0x80a   :  { %v1787_v36 = vpop.eup %1786 }
 0x80b   :  { %v1789_v37 = vpop.eup %1788  ;;  %v734_v38 = vmul.f32 %v1787_v36, %v732_v34  ;;  %vm739_vm12 = vweird.f32 %v1787_v36 }
 0x80c   :  { %v790_v39 = vadd.f32 1.0, %v1789_v37  ;;  %vm740_vm14 = vmor %vm738_vm13, %vm739_vm12 }
 0x80d   :  { %v735_v40 = vsub.f32 1.0, %v734_v38 }
 0x80e   :  { %1790 = vrcp.f32 %v790_v39  ;;  %v802_v1 = vand.u32 2147483648, %v790_v39  ;;  %vm796_vm2 = vweird.f32 %v790_v39  ;;  %v800_v3 = vand.u32 2147483647, %v790_v39 }
 0x80f   :  { %v736_v41 = vmul.f32 %v1787_v36, %v735_v40 }
 0x810   :  { %v803_v6 = vor.u32 1.1754944e-38, %v802_v1  ;;  %vm801_vm4 = vcmp.eq.f32.partialorder %v800_v3, 8.507059e+37 }
 0x811   :  { %v737_v42 = vadd.f32 %v1787_v36, %v736_v41 }
 0x813   :  { %v741_v47 = vsel %vm740_vm14, %v1787_v36, %v737_v42 }
 0x814   :  { %v1791_v43 = vpop.eup %1790  ;;  %v746_v60 = vsel %vm743_vm15, %v745_v58, %v741_v47 }
 0x815   :  { %v792_v57 = vmul.f32 %v1791_v43, %v790_v39  ;;  %vm797_vm1 = vweird.f32 %v1791_v43  ;;  %v749_v17 = vmul.f32 %v746_v60, %v2403_v5 }
 0x816   :  { %vm798_vm3 = vmor %vm796_vm2, %vm797_vm1 }
 0x817   :  { %v793_v46 = vsub.f32 1.0, %v792_v57 }
 0x819   :  { %v794_v63 = vmul.f32 %v1791_v43, %v793_v46 }
 0x81b   :  { %v795_v0 = vadd.f32 %v1791_v43, %v794_v63 }
 0x81d   :  { %v799_v4 = vsel %vm798_vm3, %v1791_v43, %v795_v0 }
 0x81e   :  { %v804_v8 = vsel %vm801_vm4, %v803_v6, %v799_v4 }
 0x81f   :  { %v807_v15 = vmul.f32 %v804_v8, %v2408_v9 }
 0x85a   :  { %v752_v59 = vpop.permute.xlu2 %751 }
 0x85b   :  { %v754_v62 = vmul.f32 %v752_v59, %v746_v60 }
 0x85d   :  { %756 = vrot.lane.b32.xlu1 %v754_v62, %s2120_s9 }
 0x86a   :  { %v810_v7 = vpop.permute.xlu0 %809 }
 0x86b   :  { %v812_v12 = vmul.f32 %v810_v7, %v804_v8 }
 0x86d   :  { %814 = vrot.lane.b32.xlu2 %v812_v12, %s2120_s9 }
 0x8c7   :  { %v815_v61 = vpop.permute.xlu2 %814 }
 0x8c8   :  { %v2436_v16 = vadd.f32 %v815_v61, %v807_v15 }
 0x8ca   :  { %1792 = vtanh.f32 %v2436_v16 }
 0x8cf   :  { %v757_v19 = vpop.permute.xlu1 %756 }
 0x8d0   :  { %v1793_v56 = vpop.eup %1792  ;;  %v2440_v22 = vadd.f32 %v757_v19, %v749_v17 }
 0x8d1   :  { %820 = vrot.lane.b32.xlu1 %v1793_v56, %s2120_s9 }
 0x8d2   :  { %1794 = vtanh.f32 %v2440_v22 }
 0x8d8   :  { %v1795_v9 = vpop.eup %1794 }
 0x8d9   :  { %160 = vperm.xlu1 %1735, %v141_v23   ;;  %762 = vrot.lane.b32.xlu0 %v1795_v9, %s2120_s9 }
 0x943   :  { %v821_v24 = vpop.permute.xlu1 %820 }
 0x944   :  { %v823_v25 = vmul.f32 %v821_v24, %v804_v8 }
 0x946   :  { %850 = vrot.lane.b32.xlu0 %v823_v25, %s2121_s20 }
 0x94b   :  { %v763_v5 = vpop.permute.xlu0 %762  ;;  %v161_v29 = vpop.permute.xlu1 %160 }
 0x94c   :  { %v765_v26 = vmul.f32 %v763_v5, %v746_v60  ;;  %vm175_vm5 = vcmp.eq.s32.totalorder %v2283_v18, %v161_v29 }
 0x94e   :  { %825 = vrot.lane.b32.xlu2 %v765_v26, %s2121_s20 }
 0x956   :  { %163 = vperm.xlu2 %1736, %v142_v27  }
 0x9a8   :  { %v826_v28 = vpop.permute.xlu2 %825 }
 0x9a9   :  { %1685 = vmatmul.msk.f32.vlgmr.msrb.gmra.mxu2 %vm315_vm0, %v826_v28 }
 0x9aa   :  { %1133 = vmatpush.msrb.mxu2 %v2301_v48 }
 0x9ac   :  { %1134 = vmatpush.msrb.mxu2 %v2305_v50 }
 0x9ae   :  { %1135 = vmatpush.msrb.mxu2 %v2311_v52 }
 0x9b0   :  { %v164_v30 = vpop.permute.xlu2 %163  ;;  %1136 = vmatpush.msrb.mxu2 %v2317_v54 }
 0x9b1   :  { %vm176_vm6 = vcmp.eq.s32.totalorder %v2283_v18, %v164_v30 }
 0x9b2   :  { %vm1664_vm7 = vmpackc.low %vm176_vm6, %vm175_vm5 }
 0x9b3   :  { %1665 = vmatmul.msk.bf16.gmra.mxu0 %vm1664_vm7, %v2119_v20 }
 0x9b8   :  { %v851_v31 = vpop.permute.xlu0 %850 }
 0x9b9   :  { %1686 = vmatmul.msk.f32.vlgmr.msrb.gmra.mxu3 %vm315_vm0, %v851_v31  ;;  %1688 = vmatmul.msk.f32.vlgmr.msra.gmra.mxu1 %vm315_vm0, %v851_v31 }
 0x9ba   :  { %1158 = vmatpush.msrb.mxu3 %v2303_v49  ;;  %1216 = vmatpush.msra.mxu1 %v2259_v10 }
 0x9bc   :  { %1159 = vmatpush.msrb.mxu3 %v2309_v51  ;;  %1217 = vmatpush.msra.mxu1 %v2262_v11 }
 0x9be   :  { %1160 = vmatpush.msrb.mxu3 %v2313_v53  ;;  %1218 = vmatpush.msra.mxu1 %v2268_v13 }
 0x9c0   :  { %1161 = vmatpush.msrb.mxu3 %v2319_v55  ;;  %1219 = vmatpush.msra.mxu1 %v2271_v14 }
 0xa2c   :  { %v846_v36 = vpop.f32.mrf.mxu2 }
 0xa30   :  { %v286_v32 = vpop.f32.mrf.mxu0 }
 0xa31   :  { %v287_v33 = vadd.f32 %v2291_v21, %v286_v32 }
 0xa36   :  { %v929_v34 = vpop.f32.mrf.mxu1 }
 0xa37   :  { %v932_v35 = vadd.f32 %v929_v34, %v287_v33 }
 0xa39   :  { %1796 = vtanh.f32 %v932_v35  ;;  %v1689_v42 = vmul.f32 -1.442695, %v932_v35 }
 0xa3c   :  { %v871_v37 = vpop.f32.mrf.mxu3 }
 0xa3d   :  { %v872_v38 = vadd.f32 %v871_v37, %v846_v36 }
 0xa3f   :  { %v1797_v39 = vpop.eup %1796  ;;  %v874_v40 = vadd.f32 %v2354_v2, %v872_v38 }
 0xa40   :  { %955 = vrot.lane.b32.xlu1 %v1797_v39, %s2120_s9 }
 0xa41   :  { %1798 = vtanh.f32 %v874_v40  ;;  %v1687_v43 = vmul.f32 -1.442695, %v874_v40 }
 0xa42   :  { %1800 = vpow2.f32 %v1689_v42 }
 0xa43   :  { %1802 = vpow2.f32 %v1687_v43 }
 0xa47   :  { %v1799_v41 = vpop.eup %1798 }
 0xa48   :  { %897 = vrot.lane.b32.xlu0 %v1799_v41, %s2120_s9  ;;  %v1801_v44 = vpop.eup %1800 }
 0xa49   :  { %v936_v45 = vadd.f32 1.0, %v1801_v44  ;;  %v1803_v47 = vpop.eup %1802 }
 0xa4a   :  { %v878_v57 = vadd.f32 1.0, %v1803_v47 }
 0xa4b   :  { %1804 = vrcp.f32 %v936_v45  ;;  %v948_v3 = vand.u32 2147483648, %v936_v45  ;;  %vm942_vm9 = vweird.f32 %v936_v45  ;;  %v946_v4 = vand.u32 2147483647, %v936_v45 }
 0xa4c   :  { %1806 = vrcp.f32 %v878_v57  ;;  %v890_v19 = vand.u32 2147483648, %v878_v57  ;;  %vm884_vm13 = vweird.f32 %v878_v57  ;;  %v888_v56 = vand.u32 2147483647, %v878_v57 }
 0xa4d   :  { %v949_v8 = vor.u32 1.1754944e-38, %v948_v3  ;;  %vm947_vm11 = vcmp.eq.f32.partialorder %v946_v4, 8.507059e+37 }
 0xa4e   :  { %v891_v9 = vor.u32 1.1754944e-38, %v890_v19  ;;  %vm889_vm15 = vcmp.eq.f32.partialorder %v888_v56, 8.507059e+37 }
 0xa51   :  { %v1805_v58 = vpop.eup %1804 }
 0xa52   :  { %v938_v59 = vmul.f32 %v1805_v58, %v936_v45  ;;  %v1807_v62 = vpop.eup %1806  ;;  %vm943_vm8 = vweird.f32 %v1805_v58 }
 0xa53   :  { %v880_v63 = vmul.f32 %v1807_v62, %v878_v57  ;;  %vm944_vm10 = vmor %vm942_vm9, %vm943_vm8  ;;  %vm885_vm12 = vweird.f32 %v1807_v62 }
 0xa54   :  { %v939_v60 = vsub.f32 1.0, %v938_v59  ;;  %vm886_vm14 = vmor %vm884_vm13, %vm885_vm12 }
 0xa55   :  { %v881_v1 = vsub.f32 1.0, %v880_v63 }
 0xa56   :  { %v940_v46 = vmul.f32 %v1805_v58, %v939_v60 }
 0xa57   :  { %v882_v7 = vmul.f32 %v1807_v62, %v881_v1 }
 0xa58   :  { %v941_v0 = vadd.f32 %v1805_v58, %v940_v46 }
 0xa59   :  { %v883_v17 = vadd.f32 %v1807_v62, %v882_v7 }
 0xa5a   :  { %v945_v6 = vsel %vm944_vm10, %v1805_v58, %v941_v0 }
 0xa5b   :  { %v950_v15 = vsel %vm947_vm11, %v949_v8, %v945_v6  ;;  %v887_v23 = vsel %vm886_vm14, %v1807_v62, %v883_v17 }
 0xa5c   :  { %v892_v25 = vsel %vm889_vm15, %v891_v9, %v887_v23  ;;  %v953_v30 = vmul.f32 %v950_v15, %v2436_v16 }
 0xa5d   :  { %v895_v26 = vmul.f32 %v892_v25, %v2440_v22 }
 0xab2   :  { %v956_v12 = vpop.permute.xlu1 %955 }
 0xab3   :  { %v958_v61 = vmul.f32 %v956_v12, %v950_v15 }
 0xab5   :  { %960 = vrot.lane.b32.xlu0 %v958_v61, %s2120_s9 }
 0xaba   :  { %v898_v24 = vpop.permute.xlu0 %897 }
 0xabb   :  { %v900_v5 = vmul.f32 %v898_v24, %v892_v25 }
 0xabd   :  { %902 = vrot.lane.b32.xlu2 %v900_v5, %s2120_s9 }
 0xb17   :  { %v903_v27 = vpop.permute.xlu2 %902 }
 0xb18   :  { %v2478_v28 = vadd.f32 %v903_v27, %v895_v26 }
 0xb1a   :  { %1808 = vtanh.f32 %v2478_v28 }
 0xb20   :  { %v1809_v29 = vpop.eup %1808 }
 0xb21   :  { %908 = vrot.lane.b32.xlu1 %v1809_v29, %s2120_s9 }
 0xb27   :  { %v961_v31 = vpop.permute.xlu0 %960 }
 0xb28   :  { %v2483_v32 = vadd.f32 %v961_v31, %v953_v30 }
 0xb2a   :  { %1810 = vtanh.f32 %v2483_v32 }
 0xb30   :  { %v1811_v33 = vpop.eup %1810 }
 0xb31   :  { %966 = vrot.lane.b32.xlu2 %v1811_v33, %s2120_s9 }
 0xb8b   :  { %v967_v34 = vpop.permute.xlu2 %966 }
 0xb8c   :  { %v969_v22 = vmul.f32 %v967_v34, %v950_v15  ;;  %v1872_v34 = vld [vmem:[#allocation7 + $0x18] sm:$0xff] }
 0xb8e   :  { %996 = vrot.lane.b32.xlu1 %v969_v22, %s2121_s20  ;;  %v1873_v22 = vld [vmem:[#allocation7 + $0x10] sm:$0xff] }
 0xb93   :  { %v909_v35 = vpop.permute.xlu1 %908 }
 0xb94   :  { %v911_v36 = vmul.f32 %v909_v35, %v892_v25  ;;  %v143_v25 = vld [vmem:[%s2607_s0 + $0x30] sm:$0xff] }
 0xb96   :  { %971 = vrot.lane.b32.xlu0 %v911_v36, %s2121_s20  ;;  %v1874_v36 = vld [vmem:[#allocation7 + $0x8] sm:$0xff] }
 0xc00   :  { %v997_v37 = vpop.permute.xlu1 %996 }
 0xc01   :  { %1691 = vmatmul.msk.f32.vlgmr.msra.gmra.mxu3 %vm315_vm0, %v997_v37  ;;  %1693 = vmatmul.msk.f32.vlgmr.msrb.gmra.mxu1 %vm315_vm0, %v997_v37 }
 0xc02   :  { %1362 = vmatpush.msrb.mxu1 %v2259_v10  ;;  %1304 = vmatpush.msra.mxu3 %v2303_v49  ;;  %v288_v10 = vpop.f32.mrf.mxu0 }
 0xc04   :  { %1363 = vmatpush.msrb.mxu1 %v2262_v11  ;;  %1305 = vmatpush.msra.mxu3 %v2309_v51  ;;  %v289_v11 = vadd.f32 %v2291_v21, %v288_v10  ;;  %v1875_v10 = vld [vmem:[#allocation7] sm:$0xff] }
 0xc06   :  { %1364 = vmatpush.msrb.mxu1 %v2268_v13  ;;  %1306 = vmatpush.msra.mxu3 %v2313_v53 }
 0xc08   :  { %v972_v16 = vpop.permute.xlu0 %971  ;;  %1365 = vmatpush.msrb.mxu1 %v2271_v14  ;;  %1307 = vmatpush.msra.mxu3 %v2319_v55 }
 0xc09   :  { %1690 = vmatmul.msk.f32.vlgmr.msra.gmra.mxu2 %vm315_vm0, %v972_v16 }
 0xc0a   :  { %1279 = vmatpush.msra.mxu2 %v2301_v48 }
 0xc0c   :  { %1280 = vmatpush.msra.mxu2 %v2305_v50 }
 0xc0e   :  { %1281 = vmatpush.msra.mxu2 %v2311_v52 }
 0xc10   :  { %1282 = vmatpush.msra.mxu2 %v2317_v54 }
 0xc7e   :  { %v1075_v13 = vpop.f32.mrf.mxu1 }
 0xc7f   :  { %v1078_v49 = vadd.f32 %v1075_v13, %v289_v11  ;;  %v1876_v11 = vld [vmem:[#allocation5 + $0x18] sm:$0xff]  ;;  %v1877_v13 = vld [vmem:[#allocation5 + $0x10] sm:$0xff] }
 0xc81   :  { %1812 = vtanh.f32 %v1078_v49  ;;  %v1694_v54 = vmul.f32 -1.442695, %v1078_v49  ;;  %v1878_v49 = vld [vmem:[#allocation5 + $0x8] sm:$0xff] }
 0xc84   :  { %v1017_v14 = vpop.f32.mrf.mxu3 }
 0xc87   :  { %v1813_v51 = vpop.eup %1812 }
 0xc88   :  { %1101 = vrot.lane.b32.xlu0 %v1813_v51, %s2120_s9  ;;  %v1879_v51 = vld [vmem:[#allocation5] sm:$0xff] }
 0xc8c   :  { %v992_v53 = vpop.f32.mrf.mxu2 }
 0xc8d   :  { %v1018_v55 = vadd.f32 %v1017_v14, %v992_v53 }
 0xc8f   :  { %v1020_v48 = vadd.f32 %v2354_v2, %v1018_v55 }
 0xc91   :  { %1814 = vtanh.f32 %v1020_v48  ;;  %v1692_v52 = vmul.f32 -1.442695, %v1020_v48 }
 0xc93   :  { %1816 = vpow2.f32 %v1692_v52 }
 0xc94   :  { %1818 = vpow2.f32 %v1694_v54 }
 0xc97   :  { %v1815_v50 = vpop.eup %1814 }
 0xc98   :  { %1043 = vrot.lane.b32.xlu2 %v1815_v50, %s2120_s9 }
 0xc99   :  { %v1817_v38 = vpop.eup %1816 }
 0xc9a   :  { %v1024_v21 = vadd.f32 1.0, %v1817_v38  ;;  %v1819_v39 = vpop.eup %1818 }
 0xc9b   :  { %v1082_v40 = vadd.f32 1.0, %v1819_v39 }
 0xc9c   :  { %1820 = vrcp.f32 %v1024_v21  ;;  %v1036_v59 = vand.u32 2147483648, %v1024_v21  ;;  %vm1030_vm2 = vweird.f32 %v1024_v21  ;;  %v1034_v60 = vand.u32 2147483647, %v1024_v21 }
 0xc9d   :  { %1822 = vrcp.f32 %v1082_v40  ;;  %v1094_v6 = vand.u32 2147483648, %v1082_v40  ;;  %vm1088_vm6 = vweird.f32 %v1082_v40  ;;  %v1092_v7 = vand.u32 2147483647, %v1082_v40 }
 0xc9e   :  { %v1037_v63 = vor.u32 1.1754944e-38, %v1036_v59  ;;  %vm1035_vm4 = vcmp.eq.f32.partialorder %v1034_v60, 8.507059e+37 }
 0xc9f   :  { %v1095_v12 = vor.u32 1.1754944e-38, %v1094_v6  ;;  %vm1093_vm8 = vcmp.eq.f32.partialorder %v1092_v7, 8.507059e+37 }
 0xca2   :  { %v1821_v41 = vpop.eup %1820 }
 0xca3   :  { %v1026_v42 = vmul.f32 %v1821_v41, %v1024_v21  ;;  %v1823_v44 = vpop.eup %1822  ;;  %vm1031_vm1 = vweird.f32 %v1821_v41 }
 0xca4   :  { %v1084_v47 = vmul.f32 %v1823_v44, %v1082_v40  ;;  %vm1032_vm3 = vmor %vm1030_vm2, %vm1031_vm1  ;;  %vm1089_vm5 = vweird.f32 %v1823_v44 }
 0xca5   :  { %v1027_v43 = vsub.f32 1.0, %v1026_v42  ;;  %vm1090_vm7 = vmor %vm1088_vm6, %vm1089_vm5 }
 0xca6   :  { %v1085_v58 = vsub.f32 1.0, %v1084_v47 }
 0xca7   :  { %v1028_v45 = vmul.f32 %v1821_v41, %v1027_v43 }
 0xca8   :  { %v1086_v46 = vmul.f32 %v1823_v44, %v1085_v58 }
 0xca9   :  { %v1029_v57 = vadd.f32 %v1821_v41, %v1028_v45 }
 0xcaa   :  { %v1087_v4 = vadd.f32 %v1823_v44, %v1086_v46 }
 0xcab   :  { %v1033_v62 = vsel %vm1032_vm3, %v1821_v41, %v1029_v57 }
 0xcac   :  { %v1038_v1 = vsel %vm1035_vm4, %v1037_v63, %v1033_v62  ;;  %v1091_v8 = vsel %vm1090_vm7, %v1823_v44, %v1087_v4 }
 0xcad   :  { %v1096_v61 = vsel %vm1093_vm8, %v1095_v12, %v1091_v8  ;;  %v1041_v24 = vmul.f32 %v1038_v1, %v2478_v28  ;;  %v144_v28 = vld [vmem:[%s2607_s0 + $0x38] sm:$0xff] }
 0xcae   :  { %v1099_v19 = vmul.f32 %v1096_v61, %v2483_v32 }
 0xcf2   :  { %v1044_v0 = vpop.permute.xlu2 %1043 }
 0xcf3   :  { %v1046_v3 = vmul.f32 %v1044_v0, %v1038_v1 }
 0xcf5   :  { %1048 = vrot.lane.b32.xlu1 %v1046_v3, %s2120_s9 }
 0xcfa   :  { %v1102_v15 = vpop.permute.xlu0 %1101 }
 0xcfb   :  { %v1104_v17 = vmul.f32 %v1102_v15, %v1096_v61 }
 0xcfd   :  { %1106 = vrot.lane.b32.xlu2 %v1104_v17, %s2120_s9 }
 0xd57   :  { %v1107_v56 = vpop.permute.xlu2 %1106 }
 0xd58   :  { %v2511_v23 = vadd.f32 %v1107_v56, %v1099_v19 }
 0xd5a   :  { %1824 = vtanh.f32 %v2511_v23 }
 0xd60   :  { %v1825_v9 = vpop.eup %1824 }
 0xd61   :  { %1112 = vrot.lane.b32.xlu1 %v1825_v9, %s2120_s9 }
 0xd67   :  { %v1049_v5 = vpop.permute.xlu1 %1048 }
 0xd68   :  { %v2519_v26 = vadd.f32 %v1049_v5, %v1041_v24 }
 0xd69   :  { %166 = vperm.xlu1 %1735, %v143_v25  }
 0xd6a   :  { %1826 = vtanh.f32 %v2519_v26 }
 0xd70   :  { %v1827_v27 = vpop.eup %1826 }
 0xd71   :  { %1054 = vrot.lane.b32.xlu0 %v1827_v27, %s2120_s9 }
 0xdd3   :  { %v1113_v29 = vpop.permute.xlu1 %1112 }
 0xdd4   :  { %v1115_v30 = vmul.f32 %v1113_v29, %v1096_v61 }
 0xdd6   :  { %1142 = vrot.lane.b32.xlu0 %v1115_v30, %s2121_s20 }
 0xddb   :  { %v167_v35 = vpop.permute.xlu1 %166 }
 0xddc   :  { %vm177_vm9 = vcmp.eq.s32.totalorder %v2283_v18, %v167_v35 }
 0xde3   :  { %v1055_v31 = vpop.permute.xlu0 %1054 }
 0xde4   :  { %v1057_v32 = vmul.f32 %v1055_v31, %v1038_v1 }
 0xde6   :  { %1117 = vrot.lane.b32.xlu2 %v1057_v32, %s2121_s20 }
 0xdee   :  { %169 = vperm.xlu2 %1736, %v144_v28  }
 0xe40   :  { %v1118_v33 = vpop.permute.xlu2 %1117 }
 0xe41   :  { %1695 = vmatmul.msk.f32.vlgmr.msrb.gmra.mxu2 %vm315_vm0, %v1118_v33 }
 0xe42   :  { %1425 = vmatpush.msrb.mxu2 %v1872_v34 }
 0xe44   :  { %1426 = vmatpush.msrb.mxu2 %v1873_v22 }
 0xe46   :  { %1427 = vmatpush.msrb.mxu2 %v1874_v36 }
 0xe48   :  { %v170_v37 = vpop.permute.xlu2 %169  ;;  %v1143_v16 = vpop.permute.xlu0 %1142  ;;  %1428 = vmatpush.msrb.mxu2 %v1875_v10 }
 0xe49   :  { %vm178_vm10 = vcmp.eq.s32.totalorder %v2283_v18, %v170_v37  ;;  %1696 = vmatmul.msk.f32.vlgmr.msrb.gmra.mxu3 %vm315_vm0, %v1143_v16  ;;  %1698 = vmatmul.msk.f32.vlgmr.msra.gmra.mxu1 %vm315_vm0, %v1143_v16  ;;  %v2537_v18 = vld [vmem:[%s2609_s2] ss:$0 sm:$0xff] }
 0xe4a   :  { %vm1666_vm11 = vmpackc.low %vm178_vm10, %vm177_vm9  ;;  %1450 = vmatpush.msrb.mxu3 %v1876_v11 }
 0xe4b   :  { %1667 = vmatmul.msk.bf16.gmra.mxu0 %vm1666_vm11, %v2119_v20 }
 0xe4c   :  { %1451 = vmatpush.msrb.mxu3 %v1877_v13 }
 0xe4e   :  { %1452 = vmatpush.msrb.mxu3 %v1878_v49 }
 0xe50   :  { %1453 = vmatpush.msrb.mxu3 %v1879_v51  ;;  %v2565_v51 = vld [vmem:[%s2613_s6] ss:$0 sm:$0xff]  ;;  %s2122_s6 = smov 96  }
 0xec4   :  { %v1138_v50 = vpop.f32.mrf.mxu2 }
 0xec6   :  { %v1221_v55 = vpop.f32.mrf.mxu1 }
 0xec8   :  { %v291_v14 = vpop.f32.mrf.mxu0 }
 0xec9   :  { %v292_v53 = vadd.f32 %v2537_v18, %v291_v14 }
 0xecb   :  { %v1224_v48 = vadd.f32 %v1221_v55, %v292_v53 }
 0xecc   :  { %v1163_v52 = vpop.f32.mrf.mxu3 }
 0xecd   :  { %1828 = vtanh.f32 %v1224_v48  ;;  %v1164_v20 = vadd.f32 %v1163_v52, %v1138_v50  ;;  %v1699_v39 = vmul.f32 -1.442695, %v1224_v48 }
 0xecf   :  { %v1166_v54 = vadd.f32 %v2354_v2, %v1164_v20 }
 0xed0   :  { %v293_v35 = vpop.f32.mrf.mxu0 }
 0xed1   :  { %1830 = vtanh.f32 %v1166_v54  ;;  %v1697_v40 = vmul.f32 -1.442695, %v1166_v54  ;;  %v294_v36 = vadd.f32 %v2537_v18, %v293_v35 }
 0xed2   :  { %1832 = vpow2.f32 %v1699_v39 }
 0xed3   :  { %v1829_v38 = vpop.eup %1828  ;;  %1834 = vpow2.f32 %v1697_v40 }
 0xed4   :  { %1247 = vrot.lane.b32.xlu1 %v1829_v38, %s2120_s9 }
 0xed7   :  { %v1831_v21 = vpop.eup %1830 }
 0xed8   :  { %1189 = vrot.lane.b32.xlu0 %v1831_v21, %s2120_s9  ;;  %v1833_v41 = vpop.eup %1832 }
 0xed9   :  { %v1228_v42 = vadd.f32 1.0, %v1833_v41  ;;  %v1835_v43 = vpop.eup %1834 }
 0xeda   :  { %v1170_v44 = vadd.f32 1.0, %v1835_v43 }
 0xedb   :  { %1836 = vrcp.f32 %v1228_v42  ;;  %v1240_v63 = vand.u32 2147483648, %v1228_v42  ;;  %vm1234_vm13 = vweird.f32 %v1228_v42  ;;  %v1238_v0 = vand.u32 2147483647, %v1228_v42 }
 0xedc   :  { %1838 = vrcp.f32 %v1170_v44  ;;  %v1182_v6 = vand.u32 2147483648, %v1170_v44  ;;  %vm1176_vm2 = vweird.f32 %v1170_v44  ;;  %v1180_v7 = vand.u32 2147483647, %v1170_v44 }
 0xedd   :  { %v1241_v4 = vor.u32 1.1754944e-38, %v1240_v63  ;;  %vm1239_vm1 = vcmp.eq.f32.partialorder %v1238_v0, 8.507059e+37 }
 0xede   :  { %v1183_v17 = vor.u32 1.1754944e-38, %v1182_v6  ;;  %vm1181_vm4 = vcmp.eq.f32.partialorder %v1180_v7, 8.507059e+37 }
 0xee1   :  { %v1837_v45 = vpop.eup %1836 }
 0xee2   :  { %v1230_v47 = vmul.f32 %v1837_v45, %v1228_v42  ;;  %v1839_v2 = vpop.eup %1838  ;;  %vm1235_vm12 = vweird.f32 %v1837_v45 }
 0xee3   :  { %v1172_v58 = vmul.f32 %v1839_v2, %v1170_v44  ;;  %vm1236_vm14 = vmor %vm1234_vm13, %vm1235_vm12  ;;  %vm1177_vm15 = vweird.f32 %v1839_v2 }
 0xee4   :  { %v1231_v57 = vsub.f32 1.0, %v1230_v47  ;;  %vm1178_vm3 = vmor %vm1176_vm2, %vm1177_vm15 }
 0xee5   :  { %v1173_v60 = vsub.f32 1.0, %v1172_v58 }
 0xee6   :  { %v1232_v59 = vmul.f32 %v1837_v45, %v1231_v57 }
 0xee7   :  { %v1174_v46 = vmul.f32 %v1839_v2, %v1173_v60 }
 0xee8   :  { %v1233_v62 = vadd.f32 %v1837_v45, %v1232_v59 }
 0xee9   :  { %v1175_v3 = vadd.f32 %v1839_v2, %v1174_v46 }
 0xeea   :  { %v1237_v1 = vsel %vm1236_vm14, %v1837_v45, %v1233_v62 }
 0xeeb   :  { %v1242_v12 = vsel %vm1239_vm1, %v1241_v4, %v1237_v1  ;;  %v1179_v61 = vsel %vm1178_vm3, %v1839_v2, %v1175_v3 }
 0xeec   :  { %v1184_v56 = vsel %vm1181_vm4, %v1183_v17, %v1179_v61  ;;  %v1245_v29 = vmul.f32 %v1242_v12, %v2511_v23 }
 0xeed   :  { %v1187_v24 = vmul.f32 %v1184_v56, %v2519_v26 }
 0xf46   :  { %v1248_v8 = vpop.permute.xlu1 %1247 }
 0xf47   :  { %v1250_v15 = vmul.f32 %v1248_v8, %v1242_v12 }
 0xf49   :  { %1252 = vrot.lane.b32.xlu0 %v1250_v15, %s2120_s9 }
 0xf4a   :  { %v1190_v19 = vpop.permute.xlu0 %1189 }
 0xf4b   :  { %v1192_v9 = vmul.f32 %v1190_v19, %v1184_v56 }
 0xf4d   :  { %1194 = vrot.lane.b32.xlu2 %v1192_v9, %s2120_s9 }
 0xfa7   :  { %v1195_v25 = vpop.permute.xlu2 %1194 }
 0xfa8   :  { %v2546_v5 = vadd.f32 %v1195_v25, %v1187_v24 }
 0xfaa   :  { %1840 = vtanh.f32 %v2546_v5 }
 0xfb0   :  { %v1841_v27 = vpop.eup %1840 }
 0xfb1   :  { %1200 = vrot.lane.b32.xlu1 %v1841_v27, %s2120_s9 }
 0xfbb   :  { %v1253_v30 = vpop.permute.xlu0 %1252 }
 0xfbc   :  { %v2551_v31 = vadd.f32 %v1253_v30, %v1245_v29 }
 0xfbe   :  { %1842 = vtanh.f32 %v2551_v31 }
 0xfc4   :  { %v1843_v32 = vpop.eup %1842 }
 0xfc5   :  { %1258 = vrot.lane.b32.xlu2 %v1843_v32, %s2120_s9 }
0x101f   :  { %v1259_v28 = vpop.permute.xlu2 %1258 }
0x1020   :  { %v1261_v26 = vmul.f32 %v1259_v28, %v1242_v12 }
0x1022   :  { %1288 = vrot.lane.b32.xlu1 %v1261_v26, %s2121_s20 }
0x1023   :  { %v1201_v33 = vpop.permute.xlu1 %1200 }
0x1024   :  { %v1203_v34 = vmul.f32 %v1201_v33, %v1184_v56 }
0x1026   :  { %1263 = vrot.lane.b32.xlu0 %v1203_v34, %s2121_s20 }
0x1094   :  { %v1289_v22 = vpop.permute.xlu1 %1288 }
0x1095   :  { %1701 = vmatmul.msk.f32.vlgmr.msra.gmra.mxu3 %vm315_vm0, %v1289_v22  ;;  %1703 = vmatmul.msk.f32.vlgmr.msrb.gmra.mxu1 %vm315_vm0, %v1289_v22 }
0x1098   :  { %v1264_v23 = vpop.permute.xlu0 %1263 }
0x1099   :  { %1700 = vmatmul.msk.f32.vlgmr.msra.gmra.mxu2 %vm315_vm0, %v1264_v23 }
0x1112   :  { %v1367_v37 = vpop.f32.mrf.mxu1 }
0x1113   :  { %v1370_v16 = vadd.f32 %v1367_v37, %v294_v36 }
0x1115   :  { %1844 = vtanh.f32 %v1370_v16  ;;  %v1704_v48 = vmul.f32 -1.442695, %v1370_v16 }
0x1118   :  { %v1309_v11 = vpop.f32.mrf.mxu3 }
0x111b   :  { %v1845_v10 = vpop.eup %1844 }
0x111c   :  { %v1284_v13 = vpop.f32.mrf.mxu2  ;;  %1393 = vrot.lane.b32.xlu0 %v1845_v10, %s2120_s9 }
0x111d   :  { %v1310_v49 = vadd.f32 %v1309_v11, %v1284_v13 }
0x111f   :  { %v1312_v14 = vadd.f32 %v2565_v51, %v1310_v49 }
0x1121   :  { %1846 = vtanh.f32 %v1312_v14  ;;  %v1702_v18 = vmul.f32 -1.442695, %v1312_v14 }
0x1123   :  { %1848 = vpow2.f32 %v1702_v18 }
0x1124   :  { %1850 = vpow2.f32 %v1704_v48 }
0x1127   :  { %v1847_v53 = vpop.eup %1846 }
0x1128   :  { %1335 = vrot.lane.b32.xlu2 %v1847_v53, %s2120_s9 }
0x1129   :  { %v1849_v55 = vpop.eup %1848 }
0x112a   :  { %v1316_v50 = vadd.f32 1.0, %v1849_v55  ;;  %v1851_v52 = vpop.eup %1850 }
0x112b   :  { %v1374_v54 = vadd.f32 1.0, %v1851_v52 }
0x112c   :  { %1852 = vrcp.f32 %v1316_v50  ;;  %v1328_v43 = vand.u32 2147483648, %v1316_v50  ;;  %vm1322_vm6 = vweird.f32 %v1316_v50  ;;  %v1326_v44 = vand.u32 2147483647, %v1316_v50 }
0x112d   :  { %1854 = vrcp.f32 %v1374_v54  ;;  %v1386_v46 = vand.u32 2147483648, %v1374_v54  ;;  %vm1380_vm10 = vweird.f32 %v1374_v54  ;;  %v1384_v63 = vand.u32 2147483647, %v1374_v54 }
0x112e   :  { %v1329_v2 = vor.u32 1.1754944e-38, %v1328_v43  ;;  %vm1327_vm8 = vcmp.eq.f32.partialorder %v1326_v44, 8.507059e+37  ;;  %v1739_v43 = vld [vmem:[%s2617_s10] ss:$0 sm:$0xff]  ;;  %s1572_s10 = sshll.u32 %s2618_s11, 4  ;;  %s1573_s10 = int_to_ptr.hbm [resolvable:$true] %s1572_s10 }
0x112f   :  { %v1387_v1 = vor.u32 1.1754944e-38, %v1386_v46  ;;  %vm1385_vm12 = vcmp.eq.f32.partialorder %v1384_v63, 8.507059e+37 }
0x1132   :  { %v1853_v20 = vpop.eup %1852 }
0x1133   :  { %v1318_v38 = vmul.f32 %v1853_v20, %v1316_v50  ;;  %v1855_v40 = vpop.eup %1854  ;;  %vm1323_vm5 = vweird.f32 %v1853_v20 }
0x1134   :  { %v1376_v42 = vmul.f32 %v1855_v40, %v1374_v54  ;;  %vm1324_vm7 = vmor %vm1322_vm6, %vm1323_vm5  ;;  %vm1381_vm9 = vweird.f32 %v1855_v40  ;;  %v1517_v54 = vld [vmem:[#allocation11 + $0x10] sm:$0xff] }
0x1135   :  { %v1319_v21 = vsub.f32 1.0, %v1318_v38  ;;  %vm1382_vm11 = vmor %vm1380_vm10, %vm1381_vm9  ;;  %v1516_v38 = vld [vmem:[#allocation11 + $0x8] sm:$0xff] }
0x1136   :  { %v1377_v47 = vsub.f32 1.0, %v1376_v42 }
0x1137   :  { %v1320_v39 = vmul.f32 %v1853_v20, %v1319_v21  ;;  %v1515_v21 = vld [vmem:[#allocation11] sm:$0xff] }
0x1138   :  { %v1378_v60 = vmul.f32 %v1855_v40, %v1377_v47 }
0x1139   :  { %v1321_v41 = vadd.f32 %v1853_v20, %v1320_v39 }
0x113a   :  { %v1379_v62 = vadd.f32 %v1855_v40, %v1378_v60 }
0x113b   :  { %v1325_v45 = vsel %vm1324_vm7, %v1853_v20, %v1321_v41  ;;  %v1518_v20 = vld [vmem:[#allocation11 + $0x18] sm:$0xff] }
0x113c   :  { %v1330_v58 = vsel %vm1327_vm8, %v1329_v2, %v1325_v45  ;;  %v1383_v0 = vsel %vm1382_vm11, %v1855_v40, %v1379_v62  ;;  %1537 = vmatpush.msra.mxu1 %v1518_v20 }
0x113d   :  { %v1388_v4 = vsel %vm1385_vm12, %v1387_v1, %v1383_v0  ;;  %v1333_v61 = vmul.f32 %v1330_v58, %v2546_v5 }
0x113e   :  { %v1391_v7 = vmul.f32 %v1388_v4, %v2551_v31  ;;  %1538 = vmatpush.msra.mxu1 %v1517_v54 }
0x1140   :  { %1539 = vmatpush.msra.mxu1 %v1516_v38 }
0x1142   :  { %1540 = vmatpush.msra.mxu1 %v1515_v21 }
0x1182   :  { %v1336_v57 = vpop.permute.xlu2 %1335 }
0x1183   :  { %v1338_v59 = vmul.f32 %v1336_v57, %v1330_v58 }
0x1185   :  { %1340 = vrot.lane.b32.xlu1 %v1338_v59, %s2120_s9 }
0x118e   :  { %v1394_v3 = vpop.permute.xlu0 %1393 }
0x118f   :  { %v1396_v6 = vmul.f32 %v1394_v3, %v1388_v4 }
0x1191   :  { %1398 = vrot.lane.b32.xlu2 %v1396_v6, %s2120_s9 }
0x11eb   :  { %v1399_v8 = vpop.permute.xlu2 %1398 }
0x11ec   :  { %v1401_v12 = vadd.f32 %v1399_v8, %v1391_v7 }
0x11ee   :  { %1856 = vtanh.f32 %v1401_v12 }
0x11f4   :  { %v1857_v15 = vpop.eup %1856 }
0x11f5   :  { %1404 = vrot.lane.b32.xlu1 %v1857_v15, %s2120_s9 }
0x11f7   :  { %v1341_v17 = vpop.permute.xlu1 %1340 }
0x11f8   :  { %v1343_v19 = vadd.f32 %v1341_v17, %v1333_v61 }
0x11fa   :  { %1858 = vtanh.f32 %v1343_v19 }
0x1200   :  { %v1859_v56 = vpop.eup %1858 }
0x1201   :  { %1346 = vrot.lane.b32.xlu0 %v1859_v56, %s2120_s9 }
0x1267   :  { %v1405_v9 = vpop.permute.xlu1 %1404 }
0x1268   :  { %v1407_v24 = vmul.f32 %v1405_v9, %v1388_v4 }
0x126a   :  { %1434 = vrot.lane.b32.xlu0 %v1407_v24, %s2121_s20 }
0x1273   :  { %v1347_v25 = vpop.permute.xlu0 %1346 }
0x1274   :  { %v1349_v27 = vmul.f32 %v1347_v25, %v1330_v58 }
0x1276   :  { %1409 = vrot.lane.b32.xlu2 %v1349_v27, %s2121_s20 }
0x12d0   :  { %v1410_v29 = vpop.permute.xlu2 %1409 }
0x12d1   :  { %1705 = vmatmul.msk.f32.vlgmr.msrb.gmra.mxu2 %vm315_vm0, %v1410_v29 }
0x12dc   :  { %v1435_v30 = vpop.permute.xlu0 %1434 }
0x12dd   :  { %1497 = vst.msk [vmem:[#allocation14] sm:$0xff] %vm315_vm0, %v1435_v30  ;;  %1706 = vmatmul.msk.f32.vlgmr.msrb.gmra.mxu3 %vm315_vm0, %v1435_v30 }
0x1354   :  { %v1430_v5 = vpop.f32.mrf.mxu2 }
0x1360   :  { %v1455_v31 = vpop.f32.mrf.mxu3 }
0x1361   :  { %v1456_v32 = vadd.f32 %v1455_v31, %v1430_v5 }
0x1363   :  { %v1458_v28 = vadd.f32 %v2565_v51, %v1456_v32 }
0x1365   :  { %1860 = vtanh.f32 %v1458_v28  ;;  %v1707_v33 = vmul.f32 -1.442695, %v1458_v28 }
0x1367   :  { %1862 = vpow2.f32 %v1707_v33 }
0x136b   :  { %v1861_v26 = vpop.eup %1860 }
0x136c   :  { %1481 = vrot.lane.b32.xlu1 %v1861_v26, %s2120_s9 }
0x136d   :  { %v1863_v34 = vpop.eup %1862 }
0x136e   :  { %v1462_v22 = vadd.f32 1.0, %v1863_v34 }
0x1370   :  { %1864 = vrcp.f32 %v1462_v22  ;;  %v1474_v10 = vand.u32 2147483648, %v1462_v22  ;;  %vm1468_vm14 = vweird.f32 %v1462_v22  ;;  %v1472_v11 = vand.u32 2147483647, %v1462_v22 }
0x1372   :  { %v1475_v49 = vor.u32 1.1754944e-38, %v1474_v10  ;;  %vm1473_vm1 = vcmp.eq.f32.partialorder %v1472_v11, 8.507059e+37 }
0x1376   :  { %v1865_v23 = vpop.eup %1864 }
0x1377   :  { %v1464_v35 = vmul.f32 %v1865_v23, %v1462_v22  ;;  %vm1469_vm13 = vweird.f32 %v1865_v23 }
0x1378   :  { %vm1470_vm15 = vmor %vm1468_vm14, %vm1469_vm13 }
0x1379   :  { %v1465_v36 = vsub.f32 1.0, %v1464_v35 }
0x137b   :  { %v1466_v37 = vmul.f32 %v1865_v23, %v1465_v36 }
0x137d   :  { %v1467_v16 = vadd.f32 %v1865_v23, %v1466_v37 }
0x137f   :  { %v1471_v13 = vsel %vm1470_vm15, %v1865_v23, %v1467_v16 }
0x1380   :  { %v1476_v14 = vsel %vm1473_vm1, %v1475_v49, %v1471_v13 }
0x1381   :  { %v1479_v18 = vmul.f32 %v1476_v14, %v1343_v19 }
0x13de   :  { %v1482_v51 = vpop.permute.xlu1 %1481 }
0x13df   :  { %v1484_v53 = vmul.f32 %v1482_v51, %v1476_v14 }
0x13e1   :  { %1486 = vrot.lane.b32.xlu2 %v1484_v53, %s2120_s9 }
0x13e9   :  { %1499 = vrot.lane.b32.xlu2 %v1401_v12, %s2122_s6 }
0x143b   :  { %v1487_v55 = vpop.permute.xlu2 %1486 }
0x143c   :  { %v1489_v48 = vadd.f32 %v1487_v55, %v1479_v18 }
0x143e   :  { %1866 = vtanh.f32 %v1489_v48 }
0x1443   :  { %v1500_v50 = vpop.permute.xlu2 %1499 }
0x1444   :  { %v1867_v52 = vpop.eup %1866  ;;  %1502 = vst.msk [vmem:[#allocation16] sm:$0xff] %vm315_vm0, %v1500_v50 }
0x1445   :  { %1492 = vrot.lane.b32.xlu0 %v1867_v52, %s2120_s9  ;;  %s1580_s9 = sshll.u32 %s2123_s8, 4  ;;  %s1581_s9 = int_to_ptr.vmem [resolvable:$true] %s1580_s9 }
0x144d   :  { %1510 = vrot.lane.b32.xlu0 %v1489_v48, %s2122_s6 }
0x14b7   :  { %v1493_v39 = vpop.permute.xlu0 %1492 }
0x14b8   :  { %v1495_v40 = vmul.f32 %v1493_v39, %v1476_v14 }
0x14ba   :  { %1504 = vrot.lane.b32.xlu1 %v1495_v40, %s2121_s20  ;;  %s2124_s20 = smov [#allocation16]  }
0x14bb   :  { %s1593_s21 = sshll.u32 %s2124_s20, 4  ;;  %s1594_s21 = int_to_ptr.vmem [resolvable:$true] %s1593_s21 }
0x14bf   :  { %v1511_v41 = vpop.permute.xlu0 %1510 }
0x14c0   :  { %1514 = vst.msk [vmem:[#allocation16 + $0x8] sm:$0xff] %vm315_vm0, %v1511_v41 }
0x152c   :  { %v1505_v42 = vpop.permute.xlu1 %1504 }
0x152d   :  { %1508 = vst.msk [vmem:[#allocation14 + $0x8] sm:$0xff] %vm315_vm0, %v1505_v42  ;;  %1708 = vmatmul.msk.f32.vlgmr.msra.gmra.mxu1 %vm315_vm0, %v1505_v42 }
0x152e   :  { %1588 = dma.vmem_to_hbm [thread:$0]  %s1581_s9, 256, %s1583_s1, [#allocation15], %s2111_s16, %s2111_s16, %s2112_s17  }
0x152f   :  { %1601 = dma.vmem_to_hbm [thread:$0]  %s1594_s21, 256, %s1596_s22, [#allocation15], %s2111_s16, %s2111_s16, %s2112_s17  }
0x1530   :  { %s1570_s16 = sshll.u32 %s2125_s13, 4  ;;  %s1571_s16 = int_to_ptr.vmem [resolvable:$true] %s1570_s16 }
0x15aa   :  { %v1542_v44 = vpop.f32.mrf.mxu1 }
0x15ab   :  { %v1543_v45 = vadd.f32 %v1739_v43, %v1542_v44 }
0x15ad   :  { %v1709_v47 = vmul.f32 -1.442695, %v1543_v45 }
0x15af   :  { %1868 = vpow2.f32 %v1709_v47 }
0x15b5   :  { %v1869_v2 = vpop.eup %1868 }
0x15b6   :  { %v1548_v57 = vadd.f32 1.0, %v1869_v2 }
0x15b8   :  { %1870 = vrcp.f32 %v1548_v57  ;;  %v1560_v62 = vand.u32 2147483648, %v1548_v57  ;;  %v1558_v63 = vand.u32 2147483647, %v1548_v57  ;;  %vm1554_vm2 = vweird.f32 %v1548_v57 }
0x15ba   :  { %v1561_v1 = vor.u32 1.1754944e-38, %v1560_v62  ;;  %vm1559_vm4 = vcmp.eq.f32.partialorder %v1558_v63, 8.507059e+37 }
0x15be   :  { %v1871_v58 = vpop.eup %1870 }
0x15bf   :  { %v1550_v59 = vmul.f32 %v1871_v58, %v1548_v57  ;;  %vm1555_vm0 = vweird.f32 %v1871_v58 }
0x15c0   :  { %vm1556_vm3 = vmor %vm1554_vm2, %vm1555_vm0 }
0x15c1   :  { %v1551_v60 = vsub.f32 1.0, %v1550_v59 }
0x15c3   :  { %v1552_v46 = vmul.f32 %v1871_v58, %v1551_v60 }
0x15c5   :  { %v1553_v0 = vadd.f32 %v1871_v58, %v1552_v46 }
0x15c7   :  { %v1557_v3 = vsel %vm1556_vm3, %v1871_v58, %v1553_v0 }
0x15c8   :  { %v1562_v4 = vsel %vm1559_vm4, %v1561_v1, %v1557_v3 }
0x15c9   :  { %1564 = vst [vmem:[#allocation13] sm:$0xff] %v1562_v4 }
0x15ca   :  { %1575 = dma.vmem_to_hbm [thread:$0]  %s1571_s16, 128, %s1573_s10, [#allocation4]  }
0x15cb   :  { %2106 = dma.done.wait [#allocation4], 128  }
0x15cc   :  { %2107 = vsyncadd [#allocation4], 4294967168 }
0x15cd   :  { %2108 = dma.done.wait [#allocation15], 512  }
0x15ce   :  { %2109 = vsyncadd [#allocation15], 4294966784 }
0x15cf   :  { %1614 = vsyncpa [#allocation3], 1 }
0x15d0   :  { %1615 = vsyncpa [#allocation6], 1 }
0x15d1   :  { %1616 = vsyncpa [#allocation9], 1 }
0x15d2   :  { %1617 = vsyncpa [#allocation12], 1 }
0x15d3   :  { %1618 = vsyncpa [#allocation4], 1 }
0x15d4   :  { %1619 = vsyncpa [#allocation15], 1 }

</bundles_post_ra>
